<compile_context>
chip_gen: v7x
topology: tpu7x:2x2x1
jax: 0.10.0
libtpu: 0.0.40
codegen_flags: <defaults>
</compile_context>

<pallas_src>
import functools

import jax
import jax.numpy as jnp
from jax.experimental import pallas as pl
from jax.experimental.pallas import tpu as pltpu


# ----------------------------- Pallas kernel ------------------------------ #
def _make_sa_kernel(nsample, tile_n):
    """Fused (layer-1 residual -> ReLU -> layer-2 dot -> max over K
    -> +b2/ReLU -> layer-3 dot -> ReLU); channels on sublanes, points on lanes."""
    K, TN = nsample, tile_n

    def kernel(qg_ref, ac_ref, w2_ref, b23_ref, w3_ref, o_ref):
        ac = ac_ref[0].astype(jnp.bfloat16)          # (C1, TN)  = W1_xyz p_i - b1
        w2 = w2_ref[...]                             # (C2, C1) bf16
        b2 = b23_ref[:, 0:1]                         # (C2, 1) f32
        b3 = b23_ref[:, 1:2]                         # (C2, 1) f32

        def slab(kk):
            # layer 1 (weights folded outside the kernel): z = q_j - ac_i, ReLU.
            # Static, lane-aligned slice (offset is a multiple of TN >= 128).
            h1 = jnp.maximum(qg_ref[0, 0, :, kk * TN:(kk + 1) * TN] - ac, 0)
            # layer 2 matmul; its bias/ReLU are hoisted past the K-max below.
            return jnp.dot(w2, h1, preferred_element_type=jnp.float32)  # (C2, TN)

        pooled = slab(0)
        for kk in range(1, K):                       # MAX aggregation over K
            pooled = jnp.maximum(pooled, slab(kk))

        # Exactly equivalent to per-neighbor "+b2, ReLU" since b2 is K-invariant
        # and ReLU is monotone (do NOT keep this hoist if per-neighbor weights
        # are ever introduced).
        pooled = jnp.maximum(pooled + b2, 0.0)       # (C2, TN) f32

        # final mlp: Conv1d(k=1) + BN(folded) + ReLU.
        h3 = jnp.dot(w3_ref[...], pooled.astype(jnp.bfloat16),
                     preferred_element_type=jnp.float32) + b3
        o_ref[0] = jnp.maximum(h3, 0.0).astype(o_ref.dtype)   # lane-dense NCW store

    return kernel


def sa_mlp_pallas(qg, ac, w2, b23, w3, *, nsample, tile_n):
    """qg : (B, n_tiles, C1, K*tile_n) bf16  gathered neighbor projections (K-major lanes)
       ac : (B, C1, N) f32                   center projection minus bias1
       w2 : (C2, C1) bf16, w3 : (C2, C2) bf16, b23 : (C2, 2) f32 (cols = b2, b3)
       returns (B, C2, N) f32 already in PyTorch NCW layout."""
    B, n_tiles, C1, M = qg.shape
    assert M == nsample * tile_n
    C2 = w2.shape[0]
    N = n_tiles * tile_n
    assert ac.shape == (B, C1, N)

    # Double-buffered pipelined blocks + small live intermediates, plus slack.
    blk = (C1 * M * 2 + C1 * tile_n * 4 + C2 * tile_n * 4
           + C2 * C1 * 2 + C2 * 2 * 4 + C2 * C2 * 2)
    inter = (2 * C1 + 4 * C2) * tile_n * 4
    vmem_limit = int(min(48 * 1024 * 1024,
                         max(8 * 1024 * 1024, 2 * (2 * blk + inter) + (4 << 20))))

    return pl.pallas_call(
        _make_sa_kernel(nsample, tile_n),
        out_shape=jax.ShapeDtypeStruct((B, C2, N), jnp.float32),
        grid_spec=pltpu.PrefetchScalarGridSpec(
            num_scalar_prefetch=0,
            grid=(B, n_tiles),
            in_specs=[
                pl.BlockSpec((1, 1, C1, M), lambda b, i: (b, i, 0, 0)),
                pl.BlockSpec((1, C1, tile_n), lambda b, i: (b, 0, i)),
                pl.BlockSpec((C2, C1), lambda b, i: (0, 0)),
                pl.BlockSpec((C2, 2), lambda b, i: (0, 0)),
                pl.BlockSpec((C2, C2), lambda b, i: (0, 0)),
            ],
            out_specs=pl.BlockSpec((1, C2, tile_n), lambda b, i: (b, 0, i)),
        ),
        compiler_params=pltpu.CompilerParams(
            dimension_semantics=("parallel", "parallel"),
            vmem_limit_bytes=vmem_limit),
    )(qg, ac, w2, b23, w3)


# ------------------------------- JAX glue ---------------------------------- #
def ball_query(xyz, radius, nsample):
    """pointnet2-style ball query (query == support, stride=1).
    Returns (B, N, nsample) int32: first `nsample` in-radius indices (ascending
    index order), padded with the first hit (self is always in radius)."""
    # TODO(synk): at large N this dense O(N^2) distance matrix + sort dominates
    # runtime and should itself move into a tiled Pallas kernel.
    B, N, _ = xyz.shape
    d2 = jnp.sum((xyz[:, :, None, :] - xyz[:, None, :, :]) ** 2, axis=-1)
    idx = jnp.arange(N, dtype=jnp.int32)
    key = jnp.where(d2 < radius * radius, idx[None, None, :], N)
    sorted_key = jnp.sort(key, axis=-1)[..., :nsample]
    first = sorted_key[..., :1]
    grouped_idx = jnp.where(sorted_key >= N, first, sorted_key)
    return grouped_idx.astype(jnp.int32)


def _pick_tile_n(n, batch, max_tile=1024, min_grid=4):
    """Largest 128-multiple divisor of N (capped) that still leaves >= min_grid
    grid steps (keeps both v7x TensorCores busy); falls back to full N if the
    point count is not 128-aligned."""
    if n % 128 != 0:
        return n
    cands = [t for t in range(128, min(max_tile, n) + 1, 128) if n % t == 0]
    if not cands:
        return n
    for t in sorted(cands, reverse=True):
        if batch * (n // t) >= min_grid:
            return t
    return cands[0]


def init_params(key, channels, eps=1e-5):
    """Deterministic synthetic params; eval-mode BatchNorm folded into convs.
    Weights are channel-first (C_out, C_in), matching the PyTorch conv layout."""
    # TODO(synk): training-mode BatchNorm (batch statistics) is not reproduced.
    c_in = channels + 3          # use_xyz: relative xyz concatenated with features
    c1 = channels // 2
    c2 = channels // 4
    ks = iter(jax.random.split(key, 16))

    def conv_w(cin, cout):
        return jax.random.normal(next(ks), (cout, cin), jnp.float32) / jnp.sqrt(cin)

    def bn(c):
        gamma = 1.0 + 0.1 * jax.random.normal(next(ks), (c,), jnp.float32)
        beta = 0.1 * jax.random.normal(next(ks), (c,), jnp.float32)
        mean = 0.1 * jax.random.normal(next(ks), (c,), jnp.float32)
        var = 1.0 + 0.1 * jax.random.uniform(next(ks), (c,), jnp.float32)
        return gamma, beta, mean, var

    def fold(w, bnp):
        gamma, beta, mean, var = bnp
        scale = gamma / jnp.sqrt(var + eps)
        return w * scale[:, None], beta - mean * scale

    w1, b1 = fold(conv_w(c_in, c1), bn(c1))   # (C1, 3+C), (C1,)
    w2, b2 = fold(conv_w(c1, c2), bn(c2))     # (C2, C1),  (C2,)
    w3, b3 = fold(conv_w(c2, c2), bn(c2))     # (C2, C2),  (C2,)
    return w1, b1, w2, b2, w3, b3


def intermediate_feature_forward(xyz, feature, params, *, radius=0.1, nsample=32,
                                 tile_n=None):
    """xyz: (B, N, 3) f32; feature: (B, C, N) f32 (PyTorch NCW).
    Returns (B, C//4, N) f32, matching Intermediate_Feature's output layout."""
    B, C, N = feature.shape
    w1, b1, w2, b2, w3, b3 = params
    C1, Cin = w1.shape
    assert Cin == C + 3

    # stride=1 -> new_xyz == xyz (no FPS); neighborhoods via ball query.
    idx = ball_query(xyz, radius, nsample)                    # (B, N, K)

    # Fold layer 1 into per-point projections (exact algebra):
    #   W1 @ [p_j - p_i ; f_j] + b1 = q_j - ac_i
    # xyz is centered per batch first (cancels exactly in the difference, but
    # keeps |q| smaller so the bf16-stored q loses less to cancellation).
    xyz_c = xyz - jnp.mean(xyz, axis=1, keepdims=True)
    a = jnp.einsum('od,bnd->bon', w1[:, :3], xyz_c)           # (B, C1, N)
    q = a + jnp.einsum('oc,bcn->bon', w1[:, 3:], feature)     # (B, C1, N)
    ac = a - b1[None, :, None]                                # (B, C1, N)

    if tile_n is None:
        tile_n = _pick_tile_n(N, B)
    assert N % tile_n == 0
    n_tiles = N // tile_n

    # K-major flat neighbor indices: the gather emits the pre-tiled
    # (B, n_tiles, C1, K*tile_n) lane-dense stream directly -- no minor-dim
    # transpose copy of the K-amplified tensor afterwards.
    # TODO(synk): next step is scalar-prefetching idx and gathering from a
    # VMEM-resident q inside the kernel so this stream never hits HBM at all.
    flat_idx = (idx.reshape(B, n_tiles, tile_n, nsample)
                   .transpose(0, 1, 3, 2)
                   .reshape(B, n_tiles, nsample * tile_n))
    q_bf = q.astype(jnp.bfloat16)
    qg = jax.vmap(jax.vmap(lambda qb, fb: jnp.take(qb, fb, axis=1),
                           in_axes=(None, 0)),
                  in_axes=(0, 0))(q_bf, flat_idx)             # (B, nt, C1, K*TN)

    b23 = jnp.stack([b2, b3], axis=1)                         # (C2, 2) f32
    return sa_mlp_pallas(qg, ac, w2.astype(jnp.bfloat16), b23,
                         w3.astype(jnp.bfloat16),
                         nsample=nsample, tile_n=tile_n)      # (B, C2, N)


def reference_forward(xyz, feature, params, *, radius=0.1, nsample=32):
    """Plain f32 JAX reference of the PyTorch forward, for validation."""
    w1, b1, w2, b2, w3, b3 = params
    idx = ball_query(xyz, radius, nsample)
    feat_nlc = jnp.transpose(feature, (0, 2, 1))
    gx = jax.vmap(lambda p, i: p[i])(xyz, idx)                # (B, N, K, 3)
    gf = jax.vmap(lambda f, i: f[i])(feat_nlc, idx)           # (B, N, K, C)
    grouped = jnp.concatenate([gx - xyz[:, :, None, :], gf], axis=-1)
    h1 = jax.nn.relu(jnp.einsum('bnkc,oc->bnko', grouped, w1) + b1)
    h2 = jax.nn.relu(jnp.einsum('bnko,po->bnkp', h1, w2) + b2)
    pooled = jnp.max(h2, axis=2)                              # (B, N, C2)
    h3 = jax.nn.relu(jnp.einsum('bnp,qp->bnq', pooled, w3) + b3)
    return jnp.transpose(h3, (0, 2, 1))                       # (B, C2, N)


# --------------------------------- main ------------------------------------ #
if __name__ == "__main__":
    B, N, channels, nsample, radius = 2, 512, 16, 32, 0.1
    key = jax.random.PRNGKey(0)
    kx, kf, kp = jax.random.split(key, 3)

    xyz = jax.random.uniform(kx, (B, N, 3), jnp.float32)              # unit cube
    feature = jax.random.normal(kf, (B, channels, N), jnp.float32)    # NCW features
    params = init_params(kp, channels)

    fwd = jax.jit(functools.partial(intermediate_feature_forward,
                                    radius=radius, nsample=nsample))
    out = jax.block_until_ready(fwd(xyz, feature, params))
    assert out.shape == (B, channels // 4, N), out.shape
    assert bool(jnp.all(jnp.isfinite(out)))

    # Correctness vs. plain-JAX f32 reference. Tolerance is loose because q is
    # streamed in bf16 and differenced against ac (mild cancellation on the
    # xyz component); keep q in f32 if tighter accuracy is ever required.
    ref = reference_forward(xyz, feature, params, radius=radius, nsample=nsample)
    ok = bool(jnp.all(jnp.abs(out - ref) <= 0.1 + 0.1 * jnp.abs(ref)))
    assert ok, f"max abs err {float(jnp.max(jnp.abs(out - ref))):.4f}"

    print("KERNEL_OK")
</pallas_src>

<mosaic_0001>
module attributes {stable_mosaic.version = 11 : i64} {
  func.func @kernel(%arg0: i32, %arg1: i32, %arg2: memref<1x1x8x8192xbf16, #tpu.memory_space<vmem>>, %arg3: memref<1x8x256xf32, #tpu.memory_space<vmem>>, %arg4: memref<4x8xbf16, #tpu.memory_space<vmem>>, %arg5: memref<4x2xf32, #tpu.memory_space<vmem>>, %arg6: memref<4x4xbf16, #tpu.memory_space<vmem>>, %arg7: memref<1x4x256xf32, #tpu.memory_space<vmem>>) attributes {dimension_semantics = [#tpu.dimension_semantics<parallel>, #tpu.dimension_semantics<parallel>], iteration_bounds = array<i64: 2, 2>, scalar_prefetch = 0 : i64, scratch_operands = 0 : i64, tpu.core_type = #tpu.core_type<tc>, window_params = [{transform_indices = @transform_0, window_bounds = array<i64: 1, 1, 8, 8192>}, {transform_indices = @transform_1, window_bounds = array<i64: 1, 8, 256>}, {pipeline_mode = #tpu.pipeline_mode<synchronous>, transform_indices = @transform_2, window_bounds = array<i64: 4, 8>}, {pipeline_mode = #tpu.pipeline_mode<synchronous>, transform_indices = @transform_3, window_bounds = array<i64: 4, 2>}, {pipeline_mode = #tpu.pipeline_mode<synchronous>, transform_indices = @transform_4, window_bounds = array<i64: 4, 4>}, {transform_indices = @transform_5, window_bounds = array<i64: 1, 4, 256>}]} {
    %c0 = arith.constant 0 : index
    %c0_0 = arith.constant 0 : index
    %c0_1 = arith.constant 0 : index
    %0 = vector.load %arg3[%c0, %c0_0, %c0_1] : memref<1x8x256xf32, #tpu.memory_space<vmem>>, vector<1x8x256xf32>
    %1 = vector.shape_cast %0 : vector<1x8x256xf32> to vector<8x256xf32>
    %2 = arith.truncf %1 : vector<8x256xf32> to vector<8x256xbf16>
    %c0_2 = arith.constant 0 : index
    %c0_3 = arith.constant 0 : index
    %3 = vector.load %arg4[%c0_2, %c0_3] : memref<4x8xbf16, #tpu.memory_space<vmem>>, vector<4x8xbf16>
    %c0_4 = arith.constant 0 : index
    %c0_5 = arith.constant 0 : index
    %4 = vector.load %arg5[%c0_4, %c0_5] : memref<4x2xf32, #tpu.memory_space<vmem>>, vector<4x1xf32>
    %c0_6 = arith.constant 0 : index
    %c1 = arith.constant 1 : index
    %5 = vector.load %arg5[%c0_6, %c1] : memref<4x2xf32, #tpu.memory_space<vmem>>, vector<4x1xf32>
    %c0_7 = arith.constant 0 : index
    %c0_8 = arith.constant 0 : index
    %c0_9 = arith.constant 0 : index
    %c0_10 = arith.constant 0 : index
    %6 = vector.load %arg2[%c0_7, %c0_8, %c0_9, %c0_10] : memref<1x1x8x8192xbf16, #tpu.memory_space<vmem>>, vector<1x1x8x256xbf16>
    %7 = vector.shape_cast %6 : vector<1x1x8x256xbf16> to vector<8x256xbf16>
    %8 = arith.subf %7, %2 : vector<8x256xbf16>
    %cst = arith.constant 0.000000e+00 : bf16
    %9 = vector.broadcast %cst : bf16 to vector<8x256xbf16>
    %10 = arith.maximumf %8, %9 : vector<8x256xbf16>
    %cst_11 = arith.constant dense<0.000000e+00> : vector<4x256xf32>
    %11 = tpu.matmul %3, %10, %cst_11 {dimension_numbers = #tpu.dot_dimension_numbers<[1], [0], [0], [1], [0, 0, 1, 1], [], []>} : vector<4x8xbf16>, vector<8x256xbf16>, vector<4x256xf32> -> vector<4x256xf32>
    %c0_12 = arith.constant 0 : index
    %c0_13 = arith.constant 0 : index
    %c0_14 = arith.constant 0 : index
    %c256 = arith.constant 256 : index
    %12 = vector.load %arg2[%c0_12, %c0_13, %c0_14, %c256] : memref<1x1x8x8192xbf16, #tpu.memory_space<vmem>>, vector<1x1x8x256xbf16>
    %13 = vector.shape_cast %12 : vector<1x1x8x256xbf16> to vector<8x256xbf16>
    %14 = arith.subf %13, %2 : vector<8x256xbf16>
    %cst_15 = arith.constant 0.000000e+00 : bf16
    %15 = vector.broadcast %cst_15 : bf16 to vector<8x256xbf16>
    %16 = arith.maximumf %14, %15 : vector<8x256xbf16>
    %cst_16 = arith.constant dense<0.000000e+00> : vector<4x256xf32>
    %17 = tpu.matmul %3, %16, %cst_16 {dimension_numbers = #tpu.dot_dimension_numbers<[1], [0], [0], [1], [0, 0, 1, 1], [], []>} : vector<4x8xbf16>, vector<8x256xbf16>, vector<4x256xf32> -> vector<4x256xf32>
    %18 = arith.maximumf %11, %17 : vector<4x256xf32>
    %c0_17 = arith.constant 0 : index
    %c0_18 = arith.constant 0 : index
    %c0_19 = arith.constant 0 : index
    %c512 = arith.constant 512 : index
    %19 = vector.load %arg2[%c0_17, %c0_18, %c0_19, %c512] : memref<1x1x8x8192xbf16, #tpu.memory_space<vmem>>, vector<1x1x8x256xbf16>
    %20 = vector.shape_cast %19 : vector<1x1x8x256xbf16> to vector<8x256xbf16>
    %21 = arith.subf %20, %2 : vector<8x256xbf16>
    %cst_20 = arith.constant 0.000000e+00 : bf16
    %22 = vector.broadcast %cst_20 : bf16 to vector<8x256xbf16>
    %23 = arith.maximumf %21, %22 : vector<8x256xbf16>
    %cst_21 = arith.constant dense<0.000000e+00> : vector<4x256xf32>
    %24 = tpu.matmul %3, %23, %cst_21 {dimension_numbers = #tpu.dot_dimension_numbers<[1], [0], [0], [1], [0, 0, 1, 1], [], []>} : vector<4x8xbf16>, vector<8x256xbf16>, vector<4x256xf32> -> vector<4x256xf32>
    %25 = arith.maximumf %18, %24 : vector<4x256xf32>
    %c0_22 = arith.constant 0 : index
    %c0_23 = arith.constant 0 : index
    %c0_24 = arith.constant 0 : index
    %c768 = arith.constant 768 : index
    %26 = vector.load %arg2[%c0_22, %c0_23, %c0_24, %c768] : memref<1x1x8x8192xbf16, #tpu.memory_space<vmem>>, vector<1x1x8x256xbf16>
    %27 = vector.shape_cast %26 : vector<1x1x8x256xbf16> to vector<8x256xbf16>
    %28 = arith.subf %27, %2 : vector<8x256xbf16>
    %cst_25 = arith.constant 0.000000e+00 : bf16
    %29 = vector.broadcast %cst_25 : bf16 to vector<8x256xbf16>
    %30 = arith.maximumf %28, %29 : vector<8x256xbf16>
    %cst_26 = arith.constant dense<0.000000e+00> : vector<4x256xf32>
    %31 = tpu.matmul %3, %30, %cst_26 {dimension_numbers = #tpu.dot_dimension_numbers<[1], [0], [0], [1], [0, 0, 1, 1], [], []>} : vector<4x8xbf16>, vector<8x256xbf16>, vector<4x256xf32> -> vector<4x256xf32>
    %32 = arith.maximumf %25, %31 : vector<4x256xf32>
    %c0_27 = arith.constant 0 : index
    %c0_28 = arith.constant 0 : index
    %c0_29 = arith.constant 0 : index
    %c1024 = arith.constant 1024 : index
    %33 = vector.load %arg2[%c0_27, %c0_28, %c0_29, %c1024] : memref<1x1x8x8192xbf16, #tpu.memory_space<vmem>>, vector<1x1x8x256xbf16>
    %34 = vector.shape_cast %33 : vector<1x1x8x256xbf16> to vector<8x256xbf16>
    %35 = arith.subf %34, %2 : vector<8x256xbf16>
    %cst_30 = arith.constant 0.000000e+00 : bf16
    %36 = vector.broadcast %cst_30 : bf16 to vector<8x256xbf16>
    %37 = arith.maximumf %35, %36 : vector<8x256xbf16>
    %cst_31 = arith.constant dense<0.000000e+00> : vector<4x256xf32>
    %38 = tpu.matmul %3, %37, %cst_31 {dimension_numbers = #tpu.dot_dimension_numbers<[1], [0], [0], [1], [0, 0, 1, 1], [], []>} : vector<4x8xbf16>, vector<8x256xbf16>, vector<4x256xf32> -> vector<4x256xf32>
    %39 = arith.maximumf %32, %38 : vector<4x256xf32>
    %c0_32 = arith.constant 0 : index
    %c0_33 = arith.constant 0 : index
    %c0_34 = arith.constant 0 : index
    %c1280 = arith.constant 1280 : index
    %40 = vector.load %arg2[%c0_32, %c0_33, %c0_34, %c1280] : memref<1x1x8x8192xbf16, #tpu.memory_space<vmem>>, vector<1x1x8x256xbf16>
    %41 = vector.shape_cast %40 : vector<1x1x8x256xbf16> to vector<8x256xbf16>
    %42 = arith.subf %41, %2 : vector<8x256xbf16>
    %cst_35 = arith.constant 0.000000e+00 : bf16
    %43 = vector.broadcast %cst_35 : bf16 to vector<8x256xbf16>
    %44 = arith.maximumf %42, %43 : vector<8x256xbf16>
    %cst_36 = arith.constant dense<0.000000e+00> : vector<4x256xf32>
    %45 = tpu.matmul %3, %44, %cst_36 {dimension_numbers = #tpu.dot_dimension_numbers<[1], [0], [0], [1], [0, 0, 1, 1], [], []>} : vector<4x8xbf16>, vector<8x256xbf16>, vector<4x256xf32> -> vector<4x256xf32>
    %46 = arith.maximumf %39, %45 : vector<4x256xf32>
    %c0_37 = arith.constant 0 : index
    %c0_38 = arith.constant 0 : index
    %c0_39 = arith.constant 0 : index
    %c1536 = arith.constant 1536 : index
    %47 = vector.load %arg2[%c0_37, %c0_38, %c0_39, %c1536] : memref<1x1x8x8192xbf16, #tpu.memory_space<vmem>>, vector<1x1x8x256xbf16>
    %48 = vector.shape_cast %47 : vector<1x1x8x256xbf16> to vector<8x256xbf16>
    %49 = arith.subf %48, %2 : vector<8x256xbf16>
    %cst_40 = arith.constant 0.000000e+00 : bf16
    %50 = vector.broadcast %cst_40 : bf16 to vector<8x256xbf16>
    %51 = arith.maximumf %49, %50 : vector<8x256xbf16>
    %cst_41 = arith.constant dense<0.000000e+00> : vector<4x256xf32>
    %52 = tpu.matmul %3, %51, %cst_41 {dimension_numbers = #tpu.dot_dimension_numbers<[1], [0], [0], [1], [0, 0, 1, 1], [], []>} : vector<4x8xbf16>, vector<8x256xbf16>, vector<4x256xf32> -> vector<4x256xf32>
    %53 = arith.maximumf %46, %52 : vector<4x256xf32>
    %c0_42 = arith.constant 0 : index
    %c0_43 = arith.constant 0 : index
    %c0_44 = arith.constant 0 : index
    %c1792 = arith.constant 1792 : index
    %54 = vector.load %arg2[%c0_42, %c0_43, %c0_44, %c1792] : memref<1x1x8x8192xbf16, #tpu.memory_space<vmem>>, vector<1x1x8x256xbf16>
    %55 = vector.shape_cast %54 : vector<1x1x8x256xbf16> to vector<8x256xbf16>
    %56 = arith.subf %55, %2 : vector<8x256xbf16>
    %cst_45 = arith.constant 0.000000e+00 : bf16
    %57 = vector.broadcast %cst_45 : bf16 to vector<8x256xbf16>
    %58 = arith.maximumf %56, %57 : vector<8x256xbf16>
    %cst_46 = arith.constant dense<0.000000e+00> : vector<4x256xf32>
    %59 = tpu.matmul %3, %58, %cst_46 {dimension_numbers = #tpu.dot_dimension_numbers<[1], [0], [0], [1], [0, 0, 1, 1], [], []>} : vector<4x8xbf16>, vector<8x256xbf16>, vector<4x256xf32> -> vector<4x256xf32>
    %60 = arith.maximumf %53, %59 : vector<4x256xf32>
    %c0_47 = arith.constant 0 : index
    %c0_48 = arith.constant 0 : index
    %c0_49 = arith.constant 0 : index
    %c2048 = arith.constant 2048 : index
    %61 = vector.load %arg2[%c0_47, %c0_48, %c0_49, %c2048] : memref<1x1x8x8192xbf16, #tpu.memory_space<vmem>>, vector<1x1x8x256xbf16>
    %62 = vector.shape_cast %61 : vector<1x1x8x256xbf16> to vector<8x256xbf16>
    %63 = arith.subf %62, %2 : vector<8x256xbf16>
    %cst_50 = arith.constant 0.000000e+00 : bf16
    %64 = vector.broadcast %cst_50 : bf16 to vector<8x256xbf16>
    %65 = arith.maximumf %63, %64 : vector<8x256xbf16>
    %cst_51 = arith.constant dense<0.000000e+00> : vector<4x256xf32>
    %66 = tpu.matmul %3, %65, %cst_51 {dimension_numbers = #tpu.dot_dimension_numbers<[1], [0], [0], [1], [0, 0, 1, 1], [], []>} : vector<4x8xbf16>, vector<8x256xbf16>, vector<4x256xf32> -> vector<4x256xf32>
    %67 = arith.maximumf %60, %66 : vector<4x256xf32>
    %c0_52 = arith.constant 0 : index
    %c0_53 = arith.constant 0 : index
    %c0_54 = arith.constant 0 : index
    %c2304 = arith.constant 2304 : index
    %68 = vector.load %arg2[%c0_52, %c0_53, %c0_54, %c2304] : memref<1x1x8x8192xbf16, #tpu.memory_space<vmem>>, vector<1x1x8x256xbf16>
    %69 = vector.shape_cast %68 : vector<1x1x8x256xbf16> to vector<8x256xbf16>
    %70 = arith.subf %69, %2 : vector<8x256xbf16>
    %cst_55 = arith.constant 0.000000e+00 : bf16
    %71 = vector.broadcast %cst_55 : bf16 to vector<8x256xbf16>
    %72 = arith.maximumf %70, %71 : vector<8x256xbf16>
    %cst_56 = arith.constant dense<0.000000e+00> : vector<4x256xf32>
    %73 = tpu.matmul %3, %72, %cst_56 {dimension_numbers = #tpu.dot_dimension_numbers<[1], [0], [0], [1], [0, 0, 1, 1], [], []>} : vector<4x8xbf16>, vector<8x256xbf16>, vector<4x256xf32> -> vector<4x256xf32>
    %74 = arith.maximumf %67, %73 : vector<4x256xf32>
    %c0_57 = arith.constant 0 : index
    %c0_58 = arith.constant 0 : index
    %c0_59 = arith.constant 0 : index
    %c2560 = arith.constant 2560 : index
    %75 = vector.load %arg2[%c0_57, %c0_58, %c0_59, %c2560] : memref<1x1x8x8192xbf16, #tpu.memory_space<vmem>>, vector<1x1x8x256xbf16>
    %76 = vector.shape_cast %75 : vector<1x1x8x256xbf16> to vector<8x256xbf16>
    %77 = arith.subf %76, %2 : vector<8x256xbf16>
    %cst_60 = arith.constant 0.000000e+00 : bf16
    %78 = vector.broadcast %cst_60 : bf16 to vector<8x256xbf16>
    %79 = arith.maximumf %77, %78 : vector<8x256xbf16>
    %cst_61 = arith.constant dense<0.000000e+00> : vector<4x256xf32>
    %80 = tpu.matmul %3, %79, %cst_61 {dimension_numbers = #tpu.dot_dimension_numbers<[1], [0], [0], [1], [0, 0, 1, 1], [], []>} : vector<4x8xbf16>, vector<8x256xbf16>, vector<4x256xf32> -> vector<4x256xf32>
    %81 = arith.maximumf %74, %80 : vector<4x256xf32>
    %c0_62 = arith.constant 0 : index
    %c0_63 = arith.constant 0 : index
    %c0_64 = arith.constant 0 : index
    %c2816 = arith.constant 2816 : index
    %82 = vector.load %arg2[%c0_62, %c0_63, %c0_64, %c2816] : memref<1x1x8x8192xbf16, #tpu.memory_space<vmem>>, vector<1x1x8x256xbf16>
    %83 = vector.shape_cast %82 : vector<1x1x8x256xbf16> to vector<8x256xbf16>
    %84 = arith.subf %83, %2 : vector<8x256xbf16>
    %cst_65 = arith.constant 0.000000e+00 : bf16
    %85 = vector.broadcast %cst_65 : bf16 to vector<8x256xbf16>
    %86 = arith.maximumf %84, %85 : vector<8x256xbf16>
    %cst_66 = arith.constant dense<0.000000e+00> : vector<4x256xf32>
    %87 = tpu.matmul %3, %86, %cst_66 {dimension_numbers = #tpu.dot_dimension_numbers<[1], [0], [0], [1], [0, 0, 1, 1], [], []>} : vector<4x8xbf16>, vector<8x256xbf16>, vector<4x256xf32> -> vector<4x256xf32>
    %88 = arith.maximumf %81, %87 : vector<4x256xf32>
    %c0_67 = arith.constant 0 : index
    %c0_68 = arith.constant 0 : index
    %c0_69 = arith.constant 0 : index
    %c3072 = arith.constant 3072 : index
    %89 = vector.load %arg2[%c0_67, %c0_68, %c0_69, %c3072] : memref<1x1x8x8192xbf16, #tpu.memory_space<vmem>>, vector<1x1x8x256xbf16>
    %90 = vector.shape_cast %89 : vector<1x1x8x256xbf16> to vector<8x256xbf16>
    %91 = arith.subf %90, %2 : vector<8x256xbf16>
    %cst_70 = arith.constant 0.000000e+00 : bf16
    %92 = vector.broadcast %cst_70 : bf16 to vector<8x256xbf16>
    %93 = arith.maximumf %91, %92 : vector<8x256xbf16>
    %cst_71 = arith.constant dense<0.000000e+00> : vector<4x256xf32>
    %94 = tpu.matmul %3, %93, %cst_71 {dimension_numbers = #tpu.dot_dimension_numbers<[1], [0], [0], [1], [0, 0, 1, 1], [], []>} : vector<4x8xbf16>, vector<8x256xbf16>, vector<4x256xf32> -> vector<4x256xf32>
    %95 = arith.maximumf %88, %94 : vector<4x256xf32>
    %c0_72 = arith.constant 0 : index
    %c0_73 = arith.constant 0 : index
    %c0_74 = arith.constant 0 : index
    %c3328 = arith.constant 3328 : index
    %96 = vector.load %arg2[%c0_72, %c0_73, %c0_74, %c3328] : memref<1x1x8x8192xbf16, #tpu.memory_space<vmem>>, vector<1x1x8x256xbf16>
    %97 = vector.shape_cast %96 : vector<1x1x8x256xbf16> to vector<8x256xbf16>
    %98 = arith.subf %97, %2 : vector<8x256xbf16>
    %cst_75 = arith.constant 0.000000e+00 : bf16
    %99 = vector.broadcast %cst_75 : bf16 to vector<8x256xbf16>
    %100 = arith.maximumf %98, %99 : vector<8x256xbf16>
    %cst_76 = arith.constant dense<0.000000e+00> : vector<4x256xf32>
    %101 = tpu.matmul %3, %100, %cst_76 {dimension_numbers = #tpu.dot_dimension_numbers<[1], [0], [0], [1], [0, 0, 1, 1], [], []>} : vector<4x8xbf16>, vector<8x256xbf16>, vector<4x256xf32> -> vector<4x256xf32>
    %102 = arith.maximumf %95, %101 : vector<4x256xf32>
    %c0_77 = arith.constant 0 : index
    %c0_78 = arith.constant 0 : index
    %c0_79 = arith.constant 0 : index
    %c3584 = arith.constant 3584 : index
    %103 = vector.load %arg2[%c0_77, %c0_78, %c0_79, %c3584] : memref<1x1x8x8192xbf16, #tpu.memory_space<vmem>>, vector<1x1x8x256xbf16>
    %104 = vector.shape_cast %103 : vector<1x1x8x256xbf16> to vector<8x256xbf16>
    %105 = arith.subf %104, %2 : vector<8x256xbf16>
    %cst_80 = arith.constant 0.000000e+00 : bf16
    %106 = vector.broadcast %cst_80 : bf16 to vector<8x256xbf16>
    %107 = arith.maximumf %105, %106 : vector<8x256xbf16>
    %cst_81 = arith.constant dense<0.000000e+00> : vector<4x256xf32>
    %108 = tpu.matmul %3, %107, %cst_81 {dimension_numbers = #tpu.dot_dimension_numbers<[1], [0], [0], [1], [0, 0, 1, 1], [], []>} : vector<4x8xbf16>, vector<8x256xbf16>, vector<4x256xf32> -> vector<4x256xf32>
    %109 = arith.maximumf %102, %108 : vector<4x256xf32>
    %c0_82 = arith.constant 0 : index
    %c0_83 = arith.constant 0 : index
    %c0_84 = arith.constant 0 : index
    %c3840 = arith.constant 3840 : index
    %110 = vector.load %arg2[%c0_82, %c0_83, %c0_84, %c3840] : memref<1x1x8x8192xbf16, #tpu.memory_space<vmem>>, vector<1x1x8x256xbf16>
    %111 = vector.shape_cast %110 : vector<1x1x8x256xbf16> to vector<8x256xbf16>
    %112 = arith.subf %111, %2 : vector<8x256xbf16>
    %cst_85 = arith.constant 0.000000e+00 : bf16
    %113 = vector.broadcast %cst_85 : bf16 to vector<8x256xbf16>
    %114 = arith.maximumf %112, %113 : vector<8x256xbf16>
    %cst_86 = arith.constant dense<0.000000e+00> : vector<4x256xf32>
    %115 = tpu.matmul %3, %114, %cst_86 {dimension_numbers = #tpu.dot_dimension_numbers<[1], [0], [0], [1], [0, 0, 1, 1], [], []>} : vector<4x8xbf16>, vector<8x256xbf16>, vector<4x256xf32> -> vector<4x256xf32>
    %116 = arith.maximumf %109, %115 : vector<4x256xf32>
    %c0_87 = arith.constant 0 : index
    %c0_88 = arith.constant 0 : index
    %c0_89 = arith.constant 0 : index
    %c4096 = arith.constant 4096 : index
    %117 = vector.load %arg2[%c0_87, %c0_88, %c0_89, %c4096] : memref<1x1x8x8192xbf16, #tpu.memory_space<vmem>>, vector<1x1x8x256xbf16>
    %118 = vector.shape_cast %117 : vector<1x1x8x256xbf16> to vector<8x256xbf16>
    %119 = arith.subf %118, %2 : vector<8x256xbf16>
    %cst_90 = arith.constant 0.000000e+00 : bf16
    %120 = vector.broadcast %cst_90 : bf16 to vector<8x256xbf16>
    %121 = arith.maximumf %119, %120 : vector<8x256xbf16>
    %cst_91 = arith.constant dense<0.000000e+00> : vector<4x256xf32>
    %122 = tpu.matmul %3, %121, %cst_91 {dimension_numbers = #tpu.dot_dimension_numbers<[1], [0], [0], [1], [0, 0, 1, 1], [], []>} : vector<4x8xbf16>, vector<8x256xbf16>, vector<4x256xf32> -> vector<4x256xf32>
    %123 = arith.maximumf %116, %122 : vector<4x256xf32>
    %c0_92 = arith.constant 0 : index
    %c0_93 = arith.constant 0 : index
    %c0_94 = arith.constant 0 : index
    %c4352 = arith.constant 4352 : index
    %124 = vector.load %arg2[%c0_92, %c0_93, %c0_94, %c4352] : memref<1x1x8x8192xbf16, #tpu.memory_space<vmem>>, vector<1x1x8x256xbf16>
    %125 = vector.shape_cast %124 : vector<1x1x8x256xbf16> to vector<8x256xbf16>
    %126 = arith.subf %125, %2 : vector<8x256xbf16>
    %cst_95 = arith.constant 0.000000e+00 : bf16
    %127 = vector.broadcast %cst_95 : bf16 to vector<8x256xbf16>
    %128 = arith.maximumf %126, %127 : vector<8x256xbf16>
    %cst_96 = arith.constant dense<0.000000e+00> : vector<4x256xf32>
    %129 = tpu.matmul %3, %128, %cst_96 {dimension_numbers = #tpu.dot_dimension_numbers<[1], [0], [0], [1], [0, 0, 1, 1], [], []>} : vector<4x8xbf16>, vector<8x256xbf16>, vector<4x256xf32> -> vector<4x256xf32>
    %130 = arith.maximumf %123, %129 : vector<4x256xf32>
    %c0_97 = arith.constant 0 : index
    %c0_98 = arith.constant 0 : index
    %c0_99 = arith.constant 0 : index
    %c4608 = arith.constant 4608 : index
    %131 = vector.load %arg2[%c0_97, %c0_98, %c0_99, %c4608] : memref<1x1x8x8192xbf16, #tpu.memory_space<vmem>>, vector<1x1x8x256xbf16>
    %132 = vector.shape_cast %131 : vector<1x1x8x256xbf16> to vector<8x256xbf16>
    %133 = arith.subf %132, %2 : vector<8x256xbf16>
    %cst_100 = arith.constant 0.000000e+00 : bf16
    %134 = vector.broadcast %cst_100 : bf16 to vector<8x256xbf16>
    %135 = arith.maximumf %133, %134 : vector<8x256xbf16>
    %cst_101 = arith.constant dense<0.000000e+00> : vector<4x256xf32>
    %136 = tpu.matmul %3, %135, %cst_101 {dimension_numbers = #tpu.dot_dimension_numbers<[1], [0], [0], [1], [0, 0, 1, 1], [], []>} : vector<4x8xbf16>, vector<8x256xbf16>, vector<4x256xf32> -> vector<4x256xf32>
    %137 = arith.maximumf %130, %136 : vector<4x256xf32>
    %c0_102 = arith.constant 0 : index
    %c0_103 = arith.constant 0 : index
    %c0_104 = arith.constant 0 : index
    %c4864 = arith.constant 4864 : index
    %138 = vector.load %arg2[%c0_102, %c0_103, %c0_104, %c4864] : memref<1x1x8x8192xbf16, #tpu.memory_space<vmem>>, vector<1x1x8x256xbf16>
    %139 = vector.shape_cast %138 : vector<1x1x8x256xbf16> to vector<8x256xbf16>
    %140 = arith.subf %139, %2 : vector<8x256xbf16>
    %cst_105 = arith.constant 0.000000e+00 : bf16
    %141 = vector.broadcast %cst_105 : bf16 to vector<8x256xbf16>
    %142 = arith.maximumf %140, %141 : vector<8x256xbf16>
    %cst_106 = arith.constant dense<0.000000e+00> : vector<4x256xf32>
    %143 = tpu.matmul %3, %142, %cst_106 {dimension_numbers = #tpu.dot_dimension_numbers<[1], [0], [0], [1], [0, 0, 1, 1], [], []>} : vector<4x8xbf16>, vector<8x256xbf16>, vector<4x256xf32> -> vector<4x256xf32>
    %144 = arith.maximumf %137, %143 : vector<4x256xf32>
    %c0_107 = arith.constant 0 : index
    %c0_108 = arith.constant 0 : index
    %c0_109 = arith.constant 0 : index
    %c5120 = arith.constant 5120 : index
    %145 = vector.load %arg2[%c0_107, %c0_108, %c0_109, %c5120] : memref<1x1x8x8192xbf16, #tpu.memory_space<vmem>>, vector<1x1x8x256xbf16>
    %146 = vector.shape_cast %145 : vector<1x1x8x256xbf16> to vector<8x256xbf16>
    %147 = arith.subf %146, %2 : vector<8x256xbf16>
    %cst_110 = arith.constant 0.000000e+00 : bf16
    %148 = vector.broadcast %cst_110 : bf16 to vector<8x256xbf16>
    %149 = arith.maximumf %147, %148 : vector<8x256xbf16>
    %cst_111 = arith.constant dense<0.000000e+00> : vector<4x256xf32>
    %150 = tpu.matmul %3, %149, %cst_111 {dimension_numbers = #tpu.dot_dimension_numbers<[1], [0], [0], [1], [0, 0, 1, 1], [], []>} : vector<4x8xbf16>, vector<8x256xbf16>, vector<4x256xf32> -> vector<4x256xf32>
    %151 = arith.maximumf %144, %150 : vector<4x256xf32>
    %c0_112 = arith.constant 0 : index
    %c0_113 = arith.constant 0 : index
    %c0_114 = arith.constant 0 : index
    %c5376 = arith.constant 5376 : index
    %152 = vector.load %arg2[%c0_112, %c0_113, %c0_114, %c5376] : memref<1x1x8x8192xbf16, #tpu.memory_space<vmem>>, vector<1x1x8x256xbf16>
    %153 = vector.shape_cast %152 : vector<1x1x8x256xbf16> to vector<8x256xbf16>
    %154 = arith.subf %153, %2 : vector<8x256xbf16>
    %cst_115 = arith.constant 0.000000e+00 : bf16
    %155 = vector.broadcast %cst_115 : bf16 to vector<8x256xbf16>
    %156 = arith.maximumf %154, %155 : vector<8x256xbf16>
    %cst_116 = arith.constant dense<0.000000e+00> : vector<4x256xf32>
    %157 = tpu.matmul %3, %156, %cst_116 {dimension_numbers = #tpu.dot_dimension_numbers<[1], [0], [0], [1], [0, 0, 1, 1], [], []>} : vector<4x8xbf16>, vector<8x256xbf16>, vector<4x256xf32> -> vector<4x256xf32>
    %158 = arith.maximumf %151, %157 : vector<4x256xf32>
    %c0_117 = arith.constant 0 : index
    %c0_118 = arith.constant 0 : index
    %c0_119 = arith.constant 0 : index
    %c5632 = arith.constant 5632 : index
    %159 = vector.load %arg2[%c0_117, %c0_118, %c0_119, %c5632] : memref<1x1x8x8192xbf16, #tpu.memory_space<vmem>>, vector<1x1x8x256xbf16>
    %160 = vector.shape_cast %159 : vector<1x1x8x256xbf16> to vector<8x256xbf16>
    %161 = arith.subf %160, %2 : vector<8x256xbf16>
    %cst_120 = arith.constant 0.000000e+00 : bf16
    %162 = vector.broadcast %cst_120 : bf16 to vector<8x256xbf16>
    %163 = arith.maximumf %161, %162 : vector<8x256xbf16>
    %cst_121 = arith.constant dense<0.000000e+00> : vector<4x256xf32>
    %164 = tpu.matmul %3, %163, %cst_121 {dimension_numbers = #tpu.dot_dimension_numbers<[1], [0], [0], [1], [0, 0, 1, 1], [], []>} : vector<4x8xbf16>, vector<8x256xbf16>, vector<4x256xf32> -> vector<4x256xf32>
    %165 = arith.maximumf %158, %164 : vector<4x256xf32>
    %c0_122 = arith.constant 0 : index
    %c0_123 = arith.constant 0 : index
    %c0_124 = arith.constant 0 : index
    %c5888 = arith.constant 5888 : index
    %166 = vector.load %arg2[%c0_122, %c0_123, %c0_124, %c5888] : memref<1x1x8x8192xbf16, #tpu.memory_space<vmem>>, vector<1x1x8x256xbf16>
    %167 = vector.shape_cast %166 : vector<1x1x8x256xbf16> to vector<8x256xbf16>
    %168 = arith.subf %167, %2 : vector<8x256xbf16>
    %cst_125 = arith.constant 0.000000e+00 : bf16
    %169 = vector.broadcast %cst_125 : bf16 to vector<8x256xbf16>
    %170 = arith.maximumf %168, %169 : vector<8x256xbf16>
    %cst_126 = arith.constant dense<0.000000e+00> : vector<4x256xf32>
    %171 = tpu.matmul %3, %170, %cst_126 {dimension_numbers = #tpu.dot_dimension_numbers<[1], [0], [0], [1], [0, 0, 1, 1], [], []>} : vector<4x8xbf16>, vector<8x256xbf16>, vector<4x256xf32> -> vector<4x256xf32>
    %172 = arith.maximumf %165, %171 : vector<4x256xf32>
    %c0_127 = arith.constant 0 : index
    %c0_128 = arith.constant 0 : index
    %c0_129 = arith.constant 0 : index
    %c6144 = arith.constant 6144 : index
    %173 = vector.load %arg2[%c0_127, %c0_128, %c0_129, %c6144] : memref<1x1x8x8192xbf16, #tpu.memory_space<vmem>>, vector<1x1x8x256xbf16>
    %174 = vector.shape_cast %173 : vector<1x1x8x256xbf16> to vector<8x256xbf16>
    %175 = arith.subf %174, %2 : vector<8x256xbf16>
    %cst_130 = arith.constant 0.000000e+00 : bf16
    %176 = vector.broadcast %cst_130 : bf16 to vector<8x256xbf16>
    %177 = arith.maximumf %175, %176 : vector<8x256xbf16>
    %cst_131 = arith.constant dense<0.000000e+00> : vector<4x256xf32>
    %178 = tpu.matmul %3, %177, %cst_131 {dimension_numbers = #tpu.dot_dimension_numbers<[1], [0], [0], [1], [0, 0, 1, 1], [], []>} : vector<4x8xbf16>, vector<8x256xbf16>, vector<4x256xf32> -> vector<4x256xf32>
    %179 = arith.maximumf %172, %178 : vector<4x256xf32>
    %c0_132 = arith.constant 0 : index
    %c0_133 = arith.constant 0 : index
    %c0_134 = arith.constant 0 : index
    %c6400 = arith.constant 6400 : index
    %180 = vector.load %arg2[%c0_132, %c0_133, %c0_134, %c6400] : memref<1x1x8x8192xbf16, #tpu.memory_space<vmem>>, vector<1x1x8x256xbf16>
    %181 = vector.shape_cast %180 : vector<1x1x8x256xbf16> to vector<8x256xbf16>
    %182 = arith.subf %181, %2 : vector<8x256xbf16>
    %cst_135 = arith.constant 0.000000e+00 : bf16
    %183 = vector.broadcast %cst_135 : bf16 to vector<8x256xbf16>
    %184 = arith.maximumf %182, %183 : vector<8x256xbf16>
    %cst_136 = arith.constant dense<0.000000e+00> : vector<4x256xf32>
    %185 = tpu.matmul %3, %184, %cst_136 {dimension_numbers = #tpu.dot_dimension_numbers<[1], [0], [0], [1], [0, 0, 1, 1], [], []>} : vector<4x8xbf16>, vector<8x256xbf16>, vector<4x256xf32> -> vector<4x256xf32>
    %186 = arith.maximumf %179, %185 : vector<4x256xf32>
    %c0_137 = arith.constant 0 : index
    %c0_138 = arith.constant 0 : index
    %c0_139 = arith.constant 0 : index
    %c6656 = arith.constant 6656 : index
    %187 = vector.load %arg2[%c0_137, %c0_138, %c0_139, %c6656] : memref<1x1x8x8192xbf16, #tpu.memory_space<vmem>>, vector<1x1x8x256xbf16>
    %188 = vector.shape_cast %187 : vector<1x1x8x256xbf16> to vector<8x256xbf16>
    %189 = arith.subf %188, %2 : vector<8x256xbf16>
    %cst_140 = arith.constant 0.000000e+00 : bf16
    %190 = vector.broadcast %cst_140 : bf16 to vector<8x256xbf16>
    %191 = arith.maximumf %189, %190 : vector<8x256xbf16>
    %cst_141 = arith.constant dense<0.000000e+00> : vector<4x256xf32>
    %192 = tpu.matmul %3, %191, %cst_141 {dimension_numbers = #tpu.dot_dimension_numbers<[1], [0], [0], [1], [0, 0, 1, 1], [], []>} : vector<4x8xbf16>, vector<8x256xbf16>, vector<4x256xf32> -> vector<4x256xf32>
    %193 = arith.maximumf %186, %192 : vector<4x256xf32>
    %c0_142 = arith.constant 0 : index
    %c0_143 = arith.constant 0 : index
    %c0_144 = arith.constant 0 : index
    %c6912 = arith.constant 6912 : index
    %194 = vector.load %arg2[%c0_142, %c0_143, %c0_144, %c6912] : memref<1x1x8x8192xbf16, #tpu.memory_space<vmem>>, vector<1x1x8x256xbf16>
    %195 = vector.shape_cast %194 : vector<1x1x8x256xbf16> to vector<8x256xbf16>
    %196 = arith.subf %195, %2 : vector<8x256xbf16>
    %cst_145 = arith.constant 0.000000e+00 : bf16
    %197 = vector.broadcast %cst_145 : bf16 to vector<8x256xbf16>
    %198 = arith.maximumf %196, %197 : vector<8x256xbf16>
    %cst_146 = arith.constant dense<0.000000e+00> : vector<4x256xf32>
    %199 = tpu.matmul %3, %198, %cst_146 {dimension_numbers = #tpu.dot_dimension_numbers<[1], [0], [0], [1], [0, 0, 1, 1], [], []>} : vector<4x8xbf16>, vector<8x256xbf16>, vector<4x256xf32> -> vector<4x256xf32>
    %200 = arith.maximumf %193, %199 : vector<4x256xf32>
    %c0_147 = arith.constant 0 : index
    %c0_148 = arith.constant 0 : index
    %c0_149 = arith.constant 0 : index
    %c7168 = arith.constant 7168 : index
    %201 = vector.load %arg2[%c0_147, %c0_148, %c0_149, %c7168] : memref<1x1x8x8192xbf16, #tpu.memory_space<vmem>>, vector<1x1x8x256xbf16>
    %202 = vector.shape_cast %201 : vector<1x1x8x256xbf16> to vector<8x256xbf16>
    %203 = arith.subf %202, %2 : vector<8x256xbf16>
    %cst_150 = arith.constant 0.000000e+00 : bf16
    %204 = vector.broadcast %cst_150 : bf16 to vector<8x256xbf16>
    %205 = arith.maximumf %203, %204 : vector<8x256xbf16>
    %cst_151 = arith.constant dense<0.000000e+00> : vector<4x256xf32>
    %206 = tpu.matmul %3, %205, %cst_151 {dimension_numbers = #tpu.dot_dimension_numbers<[1], [0], [0], [1], [0, 0, 1, 1], [], []>} : vector<4x8xbf16>, vector<8x256xbf16>, vector<4x256xf32> -> vector<4x256xf32>
    %207 = arith.maximumf %200, %206 : vector<4x256xf32>
    %c0_152 = arith.constant 0 : index
    %c0_153 = arith.constant 0 : index
    %c0_154 = arith.constant 0 : index
    %c7424 = arith.constant 7424 : index
    %208 = vector.load %arg2[%c0_152, %c0_153, %c0_154, %c7424] : memref<1x1x8x8192xbf16, #tpu.memory_space<vmem>>, vector<1x1x8x256xbf16>
    %209 = vector.shape_cast %208 : vector<1x1x8x256xbf16> to vector<8x256xbf16>
    %210 = arith.subf %209, %2 : vector<8x256xbf16>
    %cst_155 = arith.constant 0.000000e+00 : bf16
    %211 = vector.broadcast %cst_155 : bf16 to vector<8x256xbf16>
    %212 = arith.maximumf %210, %211 : vector<8x256xbf16>
    %cst_156 = arith.constant dense<0.000000e+00> : vector<4x256xf32>
    %213 = tpu.matmul %3, %212, %cst_156 {dimension_numbers = #tpu.dot_dimension_numbers<[1], [0], [0], [1], [0, 0, 1, 1], [], []>} : vector<4x8xbf16>, vector<8x256xbf16>, vector<4x256xf32> -> vector<4x256xf32>
    %214 = arith.maximumf %207, %213 : vector<4x256xf32>
    %c0_157 = arith.constant 0 : index
    %c0_158 = arith.constant 0 : index
    %c0_159 = arith.constant 0 : index
    %c7680 = arith.constant 7680 : index
    %215 = vector.load %arg2[%c0_157, %c0_158, %c0_159, %c7680] : memref<1x1x8x8192xbf16, #tpu.memory_space<vmem>>, vector<1x1x8x256xbf16>
    %216 = vector.shape_cast %215 : vector<1x1x8x256xbf16> to vector<8x256xbf16>
    %217 = arith.subf %216, %2 : vector<8x256xbf16>
    %cst_160 = arith.constant 0.000000e+00 : bf16
    %218 = vector.broadcast %cst_160 : bf16 to vector<8x256xbf16>
    %219 = arith.maximumf %217, %218 : vector<8x256xbf16>
    %cst_161 = arith.constant dense<0.000000e+00> : vector<4x256xf32>
    %220 = tpu.matmul %3, %219, %cst_161 {dimension_numbers = #tpu.dot_dimension_numbers<[1], [0], [0], [1], [0, 0, 1, 1], [], []>} : vector<4x8xbf16>, vector<8x256xbf16>, vector<4x256xf32> -> vector<4x256xf32>
    %221 = arith.maximumf %214, %220 : vector<4x256xf32>
    %c0_162 = arith.constant 0 : index
    %c0_163 = arith.constant 0 : index
    %c0_164 = arith.constant 0 : index
    %c7936 = arith.constant 7936 : index
    %222 = vector.load %arg2[%c0_162, %c0_163, %c0_164, %c7936] : memref<1x1x8x8192xbf16, #tpu.memory_space<vmem>>, vector<1x1x8x256xbf16>
    %223 = vector.shape_cast %222 : vector<1x1x8x256xbf16> to vector<8x256xbf16>
    %224 = arith.subf %223, %2 : vector<8x256xbf16>
    %cst_165 = arith.constant 0.000000e+00 : bf16
    %225 = vector.broadcast %cst_165 : bf16 to vector<8x256xbf16>
    %226 = arith.maximumf %224, %225 : vector<8x256xbf16>
    %cst_166 = arith.constant dense<0.000000e+00> : vector<4x256xf32>
    %227 = tpu.matmul %3, %226, %cst_166 {dimension_numbers = #tpu.dot_dimension_numbers<[1], [0], [0], [1], [0, 0, 1, 1], [], []>} : vector<4x8xbf16>, vector<8x256xbf16>, vector<4x256xf32> -> vector<4x256xf32>
    %228 = arith.maximumf %221, %227 : vector<4x256xf32>
    %229 = vector.broadcast %4 : vector<4x1xf32> to vector<4x256xf32>
    %230 = arith.addf %228, %229 : vector<4x256xf32>
    %cst_167 = arith.constant 0.000000e+00 : f32
    %231 = vector.broadcast %cst_167 : f32 to vector<4x256xf32>
    %232 = arith.maximumf %230, %231 : vector<4x256xf32>
    %c0_168 = arith.constant 0 : index
    %c0_169 = arith.constant 0 : index
    %233 = vector.load %arg6[%c0_168, %c0_169] : memref<4x4xbf16, #tpu.memory_space<vmem>>, vector<4x4xbf16>
    %234 = arith.truncf %232 : vector<4x256xf32> to vector<4x256xbf16>
    %cst_170 = arith.constant dense<0.000000e+00> : vector<4x256xf32>
    %235 = tpu.matmul %233, %234, %cst_170 {dimension_numbers = #tpu.dot_dimension_numbers<[1], [0], [0], [1], [0, 0, 1, 1], [], []>} : vector<4x4xbf16>, vector<4x256xbf16>, vector<4x256xf32> -> vector<4x256xf32>
    %236 = vector.broadcast %5 : vector<4x1xf32> to vector<4x256xf32>
    %237 = arith.addf %235, %236 : vector<4x256xf32>
    %cst_171 = arith.constant 0.000000e+00 : f32
    %238 = vector.broadcast %cst_171 : f32 to vector<4x256xf32>
    %239 = arith.maximumf %237, %238 : vector<4x256xf32>
    %c0_172 = arith.constant 0 : index
    %c0_173 = arith.constant 0 : index
    %c0_174 = arith.constant 0 : index
    %240 = vector.load %arg7[%c0_172, %c0_173, %c0_174] : memref<1x4x256xf32, #tpu.memory_space<vmem>>, vector<1x4x256xf32>
    %241 = vector.shape_cast %240 : vector<1x4x256xf32> to vector<4x256xf32>
    %242 = vector.shape_cast %239 : vector<4x256xf32> to vector<1x4x256xf32>
    tpu.vector_store %arg7[%c0_172, %c0_173, %c0_174], %242 {strides = array<i32>} : memref<1x4x256xf32, #tpu.memory_space<vmem>>, vector<1x4x256xf32>,
    return
  }
  func.func @transform_0(%arg0: i32, %arg1: i32) -> (i32, i32, i32, i32) {
    %c0_i32 = arith.constant 0 : i32
    %c0_i32_0 = arith.constant 0 : i32
    %c0_i32_1 = arith.constant 0 : i32
    return %arg0, %arg1, %c0_i32, %c0_i32_0 : i32, i32, i32, i32
  }
  func.func @transform_1(%arg0: i32, %arg1: i32) -> (i32, i32, i32) {
    %c0_i32 = arith.constant 0 : i32
    %c0_i32_0 = arith.constant 0 : i32
    return %arg0, %c0_i32, %arg1 : i32, i32, i32
  }
  func.func @transform_2(%arg0: i32, %arg1: i32) -> (i32, i32) {
    %c0_i32 = arith.constant 0 : i32
    %c0_i32_0 = arith.constant 0 : i32
    %c0_i32_1 = arith.constant 0 : i32
    return %c0_i32, %c0_i32_0 : i32, i32
  }
  func.func @transform_3(%arg0: i32, %arg1: i32) -> (i32, i32) {
    %c0_i32 = arith.constant 0 : i32
    %c0_i32_0 = arith.constant 0 : i32
    %c0_i32_1 = arith.constant 0 : i32
    return %c0_i32, %c0_i32_0 : i32, i32
  }
  func.func @transform_4(%arg0: i32, %arg1: i32) -> (i32, i32) {
    %c0_i32 = arith.constant 0 : i32
    %c0_i32_0 = arith.constant 0 : i32
    %c0_i32_1 = arith.constant 0 : i32
    return %c0_i32, %c0_i32_0 : i32, i32
  }
  func.func @transform_5(%arg0: i32, %arg1: i32) -> (i32, i32, i32) {
    %c0_i32 = arith.constant 0 : i32
    %c0_i32_0 = arith.constant 0 : i32
    return %arg0, %c0_i32, %arg1 : i32, i32, i32
  }
}

</mosaic_0001>

<bundles_post_ra>
// kernel: intermediate_feature_forward.1
= control target key start
LH: loop header
LB: loop body
LE: loop exit
PB: predicated region body
PF: predicated region fallthrough
CT: control target
= control target key end

     0   :  { %10 = vsyncpa [#allocation3], 0  ;;  %s3168_s0 = inlined_call_operand.vmem [shape: bf16[2,2,8,8192], index: 0, kind: input, shape index: {}]   ;;  %s3169_s1 = inlined_call_operand.vmem [shape: f32[2,8,512], index: 1, kind: input, shape index: {}]   ;;  %s3170_s2 = inlined_call_operand.vmem [shape: bf16[4,8], index: 2, kind: input, shape index: {}]   ;;  %s3171_s3 = inlined_call_operand.vmem [shape: f32[4,2], index: 3, kind: input, shape index: {}]   ;;  %s3172_s4 = inlined_call_operand.vmem [shape: bf16[4,4], index: 4, kind: input, shape index: {}]   ;;  %s3173_s5 = inlined_call_operand.hbm [shape: f32[2,4,512], index: 5, kind: output, shape index: {}]  }
   0x1   :  { %12 = vsyncpa [#allocation3 + $0x1], 0  ;;  %s2674_s18 = smov 0   ;;  %s2676_s19 = smov 0  }
   0x2   :  { %s2678_s20 = smov 0   ;;  %s2680_s21 = smov 0  }
   0x3   :  { %s2682_s22 = smov 0   ;;  %s2684_s23 = smov 0  }
   0x4   :  { %s2686_s24 = smov 0   ;;  %s2688_s25 = smov 0  }
   0x5 LB: > { %s2320_s26 = sadd.s32 4294967295, %s2639_s25   ;;  %s2321_s27 = sadd.s32 4294967294, %s2639_s25   ;;  %s2639_s25 = sphi %s2688_s25, %s18_s25   ;;  %s2635_s24 = sphi %s2686_s24, %s3188_s24   ;;  %s2631_s23 = sphi %s2684_s23, %s3187_s23   ;;  %s2627_s22 = sphi %s2682_s22, %s3186_s22   ;;  %s2623_s21 = sphi %s2680_s21, %s3185_s21   ;;  %s2619_s20 = sphi %s2678_s20, %s3184_s20   ;;  %s2615_s19 = sphi %s2676_s19, %s3183_s19   ;;  %s2611_s18 = sphi %s2674_s18, %s3182_s18  }
   0x6   : > { %s27_s28 = sadd.s32 1, %s2631_s23  ;;  %s30_s29 = sadd.s32 1, %s2635_s24 }
   0x7   : > { %p28_p0 = scmp.ge.s32.totalorder %s27_s28, 2  ;;  %p168_p1 = scmp.ne.s32.totalorder %s2619_s20, %s2615_s19 }
   0x8   : > { %p169_p2 = scmp.eq.s32.totalorder %s2320_s26, 3  ;;  %p174_p5 = scmp.ne.s32.totalorder %s2615_s19, %s2611_s18 }
   0x9   : > { %s3190_s28 = smov (%p28_p0, %s27_s28), 0  ;;  %s3192_s29 = smov (!%p28_p0, %s30_s29), %s2635_s24 }
   0xa   : > { %3176 = sst [smem:[#allocation5_spill]] %s3190_s28  ;;  %s154_s30 = ssub.s32 %s2631_s23, %s3190_s28 }
   0xb   : > { %p2725_p3 = por %p169_p2, %p168_p1  ;;  %p32_p4 = scmp.ge.s32.totalorder %s3192_s29, 2 }
   0xc   : > { %p175_p6 = scmp.eq.s32.totalorder %s2321_s27, 3  ;;  %p2324_p7 = scmp.ge.s32.totalorder %s2639_s25, 1 }
   0xd   : > { %s3194_s29 = smov (%p32_p4, %s3192_s29), 0  ;;  %p227_p9 = scmp.lt.s32.totalorder %s2639_s25, 5 }
   0xe   : > { %3178 = sst [smem:[#allocation6_spill]] %s3194_s29  ;;  %p2734_p8 = por %p175_p6, %p174_p5 }
   0xf   : > { %s153_s8 = ssub.s32 %s2635_s24, %s3194_s29  ;;  %s158_s9 = sadd.s32 1, %s2619_s20 }
  0x10   : > { %s155_s10 = sor.u32 %s154_s30, %s153_s8  ;;  %p228_p10 = pnand %p2324_p7, %p227_p9 }
  0x11   : > { %p156_p11 = scmp.eq.s32.totalorder %s155_s10, 0  ;;  %p268_p12 = scmp.lt.s32.totalorder (!%p228_p10), %s2627_s22, 1  ;;  %v2641_v0 = vmov (!%p228_p10), 0   ;;  %vm313_vm0 = vcmask (!%p228_p10), 1043456   ;;  %v2788_v22 = vld [vmem:[%s3171_s3] sm:$0xf] (!%p228_p10) }
  0x12   : > { %231 = sbr.rel (%p228_p10) target bundleno = 628 (0x274), region = 40  ;;  %p270_p13 = scmp.lt.s32.totalorder (!%p228_p10), %s2623_s21, 1  ;;  %352 = vmatprep.mubr.bf16.mxu0 (!%p228_p10), %v2641_v0  ;;  %407 = vmatprep.mubr.bf16.mxu1 (!%p228_p10), %v2641_v0  ;;  %v2800_v35 = vld [vmem:[%s3170_s2] sm:$0x3] (!%p228_p10)  ;;  %vm309_vm1 = vcmask (!%p228_p10), 64512   ;;  %vm2148_vm2 = vcmask (!%p228_p10), 1041408  }
  0x13   : > { %s2743_s11 = scalar_select %p156_p11, %s2619_s20, %s158_s9  }
  0x14   : > { %s2748_s12 = sshll.u32 (!%p228_p10), %s2623_s21, 1  ;;  %2543 = vset.pattern.permute.xlu0 (!%p228_p10), %v2641_v0  ;;  %vm2144_vm3 = vcmask (!%p228_p10), 31744   ;;  %s2465_s30 = sshll.u32 (!%p228_p10), %s2627_s22, 2 }
  0x15   : > { %p280_p0 = scmp.lt.s32.totalorder (!%p228_p10), %s2748_s12, 3  ;;  %2130 = vperm.xlu0 (!%p228_p10), %2543, %v2788_v22   ;;  %s2216_s8 = sadd.s32 (!%p228_p10), %s2465_s30, %s2748_s12 }
  0x19   : > { %s269_s13 = scalar_select %p268_p12, %s2627_s22, 1 }
  0x1a   : > { %s3196_s21 = smov (!%p270_p13, %s2623_s21), 1 }
  0x1b   : > { %s2327_s14 = sshll.u32 %s269_s13, 7  ;;  %s2326_s15 = sshll.u32 %s3196_s21, 6 }
  0x1c   : > { %s274_s16 = sadd.s32 %s2327_s14, %s2326_s15  ;;  %s2330_s26 = sshll.u32 %s269_s13, 2 }
  0x1d   : > { %s2328_s17 = sshll.u32 %s274_s16, 2  ;;  %s2643_s13 = smov [#allocation2]  }
  0x1e   : > { %s281_s27 = scalar_select %p280_p0, %s2748_s12, 3 }
  0x1f   : > { %s2760_s9 = scalar_lea.vmem %s3168_s0, %s2328_s17  ;;  %s2549_s15 = sshll.u32 %s2643_s13, 4  ;;  %s2550_s15 = int_to_ptr.vmem [resolvable:$false] %s2549_s15 }
  0x20   : > { %s283_s10 = sadd.s32 %s2330_s26, %s281_s27  ;;  %v295_v1 = vld [vmem:[%s2760_s9] sm:$0xff]  ;;  %v361_v2 = vld [vmem:[%s2760_s9 + $0x8] sm:$0xff]  ;;  %v418_v3 = vld [vmem:[%s2760_s9 + $0x10] sm:$0xff]  ;;  %s265_s26 = sand.u32 1, %s2615_s19  }
  0x21   : > { %s2331_s29 = sshll.u32 %s283_s10, 3  ;;  %v475_v6 = vld [vmem:[%s2760_s9 + $0x18] sm:$0xff]  ;;  %v532_v8 = vld [vmem:[%s2760_s9 + $0x20] sm:$0xff]  ;;  %v589_v9 = vld [vmem:[%s2760_s9 + $0x28] sm:$0xff]  ;;  %s2325_s27 = sshll.u32 %s265_s26, 3 }
  0x22   : > { %s285_s14 = scalar_lea.vmem %s3169_s1, %s2331_s29  ;;  %v646_v33 = vld [vmem:[%s2760_s9 + $0x30] sm:$0xff]  ;;  %v703_v34 = vld [vmem:[%s2760_s9 + $0x38] sm:$0xff]  ;;  %v760_v46 = vld [vmem:[%s2760_s9 + $0x40] sm:$0xff]  ;;  %s267_s10 = scalar_lea.vmem [#allocation2], %s2325_s27 }
  0x23   : > { %v289_v4 = vld [vmem:[%s285_s14] sm:$0xff]  ;;  %v290_v5 = vld [vmem:[%s285_s14 + $0x8] sm:$0xff]  ;;  %v874_v60 = vld [vmem:[%s2760_s9 + $0x50] sm:$0xff]  ;;  %s2220_s21 = sshll.u32 %s267_s10, 4  ;;  %s2204_s22 = scalar_lea.sflag [#allocation3], %s265_s26  ;;  %s3117_s21 = int_to_ptr.vmem [resolvable:$true] %s2220_s21 }
  0x24   : > { %v2769_v7 = vpack.c.bf16 %v290_v5, %v289_v4  ;;  %v817_v47 = vld [vmem:[%s2760_s9 + $0x48] sm:$0xff]  ;;  %v2831_v56 = vld [vmem:[%s2760_s9 + $0xa0] sm:$0xff]  ;;  %v931_v61 = vld [vmem:[%s2760_s9 + $0x58] sm:$0xff]  ;;  %s2545_s12 = scalar_lea.vmem %s3117_s21, 128  ;;  %s2551_s16 = scalar_lea.vmem %s2550_s15, 256 }
  0x25   : > { %v2834_v57 = vld [vmem:[%s2760_s9 + $0xa8] sm:$0xff]  ;;  %p2546_p1 = scmp.ne.s32.totalorder %s3117_s21, %s2545_s12  ;;  %p2552_p5 = scmp.lt.s32.totalorder %s3117_s21, %s2550_s15 }
  0x26   : > { %v302_v10 = vsub.bf16 %v295_v1, %v2769_v7  ;;  %v362_v11 = vsub.bf16 %v361_v2, %v2769_v7  ;;  %v419_v12 = vsub.bf16 %v418_v3, %v2769_v7  ;;  %v476_v13 = vsub.bf16 %v475_v6, %v2769_v7  ;;  %v2847_v1 = vld [vmem:[%s2760_s9 + $0xb0] sm:$0xff]  ;;  %v2850_v2 = vld [vmem:[%s2760_s9 + $0xb8] sm:$0xff]  ;;  %v2853_v3 = vld [vmem:[%s2760_s9 + $0xc0] sm:$0xff]  ;;  %p2553_p6 = scmp.lt.s32.totalorder %s2551_s16, %s2545_s12 }
  0x27   : > { %v533_v14 = vsub.bf16 %v532_v8, %v2769_v7  ;;  %v590_v15 = vsub.bf16 %v589_v9, %v2769_v7  ;;  %v647_v40 = vsub.bf16 %v646_v33, %v2769_v7  ;;  %v704_v41 = vsub.bf16 %v703_v34, %v2769_v7  ;;  %p2547_p2 = pnand %p2546_p1, %p2725_p3 }
  0x28   : > { %v303_v16 = vmax.bf16 %v2641_v0, %v302_v10  ;;  %v363_v17 = vmax.bf16 %v2641_v0, %v362_v11  ;;  %v420_v18 = vmax.bf16 %v2641_v0, %v419_v12  ;;  %v477_v19 = vmax.bf16 %v2641_v0, %v476_v13  ;;  %p2554_p7 = por %p2553_p6, %p2552_p5 }
  0x29   : > { %v534_v20 = vmax.bf16 %v2641_v0, %v533_v14  ;;  %v591_v21 = vmax.bf16 %v2641_v0, %v590_v15  ;;  %v648_v44 = vmax.bf16 %v2641_v0, %v647_v40  ;;  %v705_v45 = vmax.bf16 %v2641_v0, %v704_v41  ;;  %v2870_v14 = vld [vmem:[%s2760_s9 + $0xc8] sm:$0xff]  ;;  %v2873_v15 = vld [vmem:[%s2760_s9 + $0xd0] sm:$0xff]  ;;  %p2548_p4 = pneg %p2547_p2 }
  0x2a   : > { %v2334_v23 = vcombine.high %v303_v16, %v303_v16  ;;  %v2338_v24 = vcombine.high %v363_v17, %v363_v17  ;;  %v2333_v25 = vcombine.low %v303_v16, %v303_v16  ;;  %v2337_v26 = vcombine.low %v363_v17, %v363_v17 }
  0x2b   : > { %v2342_v27 = vcombine.high %v420_v18, %v420_v18  ;;  %v2346_v28 = vcombine.high %v477_v19, %v477_v19  ;;  %v2341_v29 = vcombine.low %v420_v18, %v420_v18  ;;  %v2345_v30 = vcombine.low %v477_v19, %v477_v19  ;;  %p2555_p9 = pnand %p2554_p7, %p2548_p4 }
  0x2c   : > { %2335 = vmatprep.subr.msk.bf16.mxu0 %vm313_vm0, %v2334_v23  ;;  %2339 = vmatprep.subr.msk.bf16.mxu1 %vm313_vm0, %v2338_v24  ;;  %v315_v31 = vsel %vm313_vm0, %v2333_v25, 0  ;;  %v370_v32 = vsel %vm313_vm0, %v2337_v26, 0  ;;  %v2350_v38 = vcombine.high %v534_v20, %v534_v20  ;;  %v2354_v39 = vcombine.high %v591_v21, %v591_v21  ;;  %v2888_v25 = vld [vmem:[%s2760_s9 + $0xd8] sm:$0xff]  ;;  %v2891_v26 = vld [vmem:[%s2760_s9 + $0xe0] sm:$0xff] }
  0x2d   : > { %321 = vmatpush1.bf16.msra.mxu0 %v315_v31  ;;  %376 = vmatpush1.bf16.msra.mxu1 %v370_v32  ;;  %v427_v36 = vsel %vm313_vm0, %v2341_v29, 0  ;;  %v484_v37 = vsel %vm313_vm0, %v2345_v30, 0  ;;  %v2349_v42 = vcombine.low %v534_v20, %v534_v20  ;;  %v2353_v43 = vcombine.low %v591_v21, %v591_v21  ;;  %v988_v20 = vld [vmem:[%s2760_s9 + $0x60] sm:$0xff]  ;;  %v1045_v21 = vld [vmem:[%s2760_s9 + $0x68] sm:$0xff] }
  0x2e   : > { %2343 = vmatprep.subr.msk.bf16.mxu0 %vm313_vm0, %v2342_v27  ;;  %2347 = vmatprep.subr.msk.bf16.mxu1 %vm313_vm0, %v2346_v28  ;;  %v2358_v50 = vcombine.high %v648_v44, %v648_v44  ;;  %v2362_v51 = vcombine.high %v705_v45, %v705_v45  ;;  %v761_v52 = vsub.bf16 %v760_v46, %v2769_v7  ;;  %v1102_v46 = vld [vmem:[%s2760_s9 + $0x70] sm:$0xff] }
  0x2f   : > { %v541_v48 = vsel %vm313_vm0, %v2349_v42, 0  ;;  %v598_v49 = vsel %vm313_vm0, %v2353_v43, 0  ;;  %v818_v53 = vsub.bf16 %v817_v47, %v2769_v7  ;;  %v2357_v54 = vcombine.low %v648_v44, %v648_v44  ;;  %v1159_v47 = vld [vmem:[%s2760_s9 + $0x78] sm:$0xff] }
  0x30   : > { %2336 = vmatmul.mubr.msk.bf16.vlgmr.msra.gmra.mrb[0].mxu0 %vm309_vm1, %v2800_v35  ;;  %2340 = vmatmul.mubr.msk.bf16.vlgmr.msra.gmra.mrb[0].mxu1 %vm309_vm1, %v2800_v35  ;;  %v2361_v55 = vcombine.low %v705_v45, %v705_v45  ;;  %v762_v58 = vmax.bf16 %v2641_v0, %v761_v52  ;;  %v1445_v62 = vsub.bf16 %v2831_v56, %v2769_v7 }
  0x31   : > { %433 = vmatpush1.bf16.msra.mxu0 %v427_v36  ;;  %490 = vmatpush1.bf16.msra.mxu1 %v484_v37  ;;  %v819_v59 = vmax.bf16 %v2641_v0, %v818_v53  ;;  %v1502_v63 = vsub.bf16 %v2834_v57, %v2769_v7  ;;  %v655_v4 = vsel %vm313_vm0, %v2357_v54, 0  ;;  %v875_v9 = vsub.bf16 %v874_v60, %v2769_v7  ;;  %v2902_v36 = vld [vmem:[%s2760_s9 + $0xe8] sm:$0xff]  ;;  %v2905_v37 = vld [vmem:[%s2760_s9 + $0xf0] sm:$0xff]  ;;  %v1216_v60 = vld [vmem:[%s2760_s9 + $0x80] sm:$0xff] }
  0x32   : > { %464 = vmatprep.mubr.bf16.mxu0 %v2641_v0  ;;  %521 = vmatprep.mubr.bf16.mxu1 %v2641_v0  ;;  %v712_v5 = vsel %vm313_vm0, %v2361_v55, 0  ;;  %v2366_v6 = vcombine.high %v762_v58, %v762_v58  ;;  %v932_v10 = vsub.bf16 %v931_v61, %v2769_v7  ;;  %v1559_v11 = vsub.bf16 %v2847_v1, %v2769_v7  ;;  %v1273_v61 = vld [vmem:[%s2760_s9 + $0x88] sm:$0xff] }
  0x33   : > { %2351 = vmatprep.subr.msk.bf16.mxu0 %vm313_vm0, %v2350_v38  ;;  %2355 = vmatprep.subr.msk.bf16.mxu1 %vm313_vm0, %v2354_v39  ;;  %v2370_v8 = vcombine.high %v819_v59, %v819_v59  ;;  %v1616_v12 = vsub.bf16 %v2850_v2, %v2769_v7  ;;  %v1673_v13 = vsub.bf16 %v2853_v3, %v2769_v7  ;;  %v2908_v38 = vld [vmem:[%s2760_s9 + $0xf8] sm:$0xff] }
  0x34   : > { %v2365_v16 = vcombine.low %v762_v58, %v762_v58  ;;  %v2369_v17 = vcombine.low %v819_v59, %v819_v59  ;;  %v876_v18 = vmax.bf16 %v2641_v0, %v875_v9  ;;  %v933_v19 = vmax.bf16 %v2641_v0, %v932_v10 }
  0x35   : > { %v1730_v23 = vsub.bf16 %v2870_v14, %v2769_v7  ;;  %v1787_v24 = vsub.bf16 %v2873_v15, %v2769_v7  ;;  %v989_v29 = vsub.bf16 %v988_v20, %v2769_v7  ;;  %v1046_v30 = vsub.bf16 %v1045_v21, %v2769_v7  ;;  %v1330_v20 = vld [vmem:[%s2760_s9 + $0x90] sm:$0xff]  ;;  %v1387_v21 = vld [vmem:[%s2760_s9 + $0x98] sm:$0xff]  ;;  %s2466_s9 = sshll.u32 %s2216_s8, 6 }
  0x36   : > { %v769_v27 = vsel %vm313_vm0, %v2365_v16, 0  ;;  %v826_v28 = vsel %vm313_vm0, %v2369_v17, 0  ;;  %v2374_v31 = vcombine.high %v876_v18, %v876_v18  ;;  %v2378_v32 = vcombine.high %v933_v19, %v933_v19  ;;  %s3115_s29 = scalar_lea.hbm %s3173_s5, %s2466_s9 }
  0x37   : > { %v1844_v33 = vsub.bf16 %v2888_v25, %v2769_v7  ;;  %v1901_v34 = vsub.bf16 %v2891_v26, %v2769_v7  ;;  %v2373_v39 = vcombine.low %v876_v18, %v876_v18  ;;  %v2377_v40 = vcombine.low %v933_v19, %v933_v19 }
  0x38   : > { %2344 = vmatmul.mubr.msk.bf16.vlgmr.msra.gmra.mrb[4].mxu0 %vm309_vm1, %v2800_v35  ;;  %2348 = vmatmul.mubr.msk.bf16.vlgmr.msra.gmra.mrb[4].mxu1 %vm309_vm1, %v2800_v35  ;;  %v1958_v41 = vsub.bf16 %v2902_v36, %v2769_v7  ;;  %v2015_v42 = vsub.bf16 %v2905_v37, %v2769_v7  ;;  %v2072_v43 = vsub.bf16 %v2908_v38, %v2769_v7 }
  0x39   : > { %547 = vmatpush1.bf16.msra.mxu0 %v541_v48  ;;  %604 = vmatpush1.bf16.msra.mxu1 %v598_v49  ;;  %v990_v44 = vmax.bf16 %v2641_v0, %v989_v29  ;;  %v1047_v45 = vmax.bf16 %v2641_v0, %v1046_v30  ;;  %v883_v48 = vsel %vm313_vm0, %v2373_v39, 0  ;;  %v940_v49 = vsel %vm313_vm0, %v2377_v40, 0 }
  0x3a   : > { %578 = vmatprep.mubr.bf16.mxu0 %v2641_v0  ;;  %635 = vmatprep.mubr.bf16.mxu1 %v2641_v0  ;;  %v1103_v52 = vsub.bf16 %v1102_v46, %v2769_v7  ;;  %v1160_v53 = vsub.bf16 %v1159_v47, %v2769_v7  ;;  %v1217_v9 = vsub.bf16 %v1216_v60, %v2769_v7 }
  0x3b   : > { %2359 = vmatprep.subr.msk.bf16.mxu0 %vm313_vm0, %v2358_v50  ;;  %2363 = vmatprep.subr.msk.bf16.mxu1 %vm313_vm0, %v2362_v51  ;;  %v2382_v50 = vcombine.high %v990_v44, %v990_v44  ;;  %v2386_v51 = vcombine.high %v1047_v45, %v1047_v45  ;;  %v2381_v54 = vcombine.low %v990_v44, %v990_v44 }
  0x3c   : > { %v2385_v55 = vcombine.low %v1047_v45, %v1047_v45  ;;  %v1104_v58 = vmax.bf16 %v2641_v0, %v1103_v52  ;;  %v1161_v59 = vmax.bf16 %v2641_v0, %v1160_v53  ;;  %v1274_v10 = vsub.bf16 %v1273_v61, %v2769_v7 }
  0x3d   : > { %v1218_v18 = vmax.bf16 %v2641_v0, %v1217_v9  ;;  %v1446_v52 = vmax.bf16 %v2641_v0, %v1445_v62  ;;  %v1503_v53 = vmax.bf16 %v2641_v0, %v1502_v63  ;;  %v1560_v62 = vmax.bf16 %v2641_v0, %v1559_v11 }
  0x3e   : > { %v2389_v16 = vcombine.low %v1104_v58, %v1104_v58  ;;  %v2393_v17 = vcombine.low %v1161_v59, %v1161_v59  ;;  %v1275_v19 = vmax.bf16 %v2641_v0, %v1274_v10  ;;  %v1617_v63 = vmax.bf16 %v2641_v0, %v1616_v12 }
  0x3f   : > { %v2398_v29 = vcombine.high %v1218_v18, %v1218_v18  ;;  %v2397_v39 = vcombine.low %v1218_v18, %v1218_v18  ;;  %v2413_v56 = vcombine.low %v1446_v52, %v1446_v52  ;;  %v2417_v57 = vcombine.low %v1503_v53, %v1503_v53 }
  0x40   : > { %2352 = vmatmul.mubr.msk.bf16.vlgmr.msra.gmra.mrb[8].mxu0 %vm309_vm1, %v2800_v35  ;;  %2356 = vmatmul.mubr.msk.bf16.vlgmr.msra.gmra.mrb[8].mxu1 %vm309_vm1, %v2800_v35  ;;  %v2402_v30 = vcombine.high %v1275_v19, %v1275_v19  ;;  %v2401_v40 = vcombine.low %v1275_v19, %v1275_v19  ;;  %v2421_v1 = vcombine.low %v1560_v62, %v1560_v62 }
  0x41   : > { %661 = vmatpush1.bf16.msra.mxu0 %v655_v4  ;;  %718 = vmatpush1.bf16.msra.mxu1 %v712_v5  ;;  %v997_v4 = vsel %vm313_vm0, %v2381_v54, 0  ;;  %v1054_v5 = vsel %vm313_vm0, %v2385_v55, 0  ;;  %v1225_v46 = vsel %vm313_vm0, %v2397_v39, 0  ;;  %v1453_v60 = vsel %vm313_vm0, %v2413_v56, 0 }
  0x42   : > { %692 = vmatprep.mubr.bf16.mxu0 %v2641_v0  ;;  %749 = vmatprep.mubr.bf16.mxu1 %v2641_v0  ;;  %v1282_v47 = vsel %vm313_vm0, %v2401_v40, 0  ;;  %v1510_v61 = vsel %vm313_vm0, %v2417_v57, 0  ;;  %v2425_v2 = vcombine.low %v1617_v63, %v1617_v63  ;;  %v1674_v11 = vmax.bf16 %v2641_v0, %v1673_v13 }
  0x43   : > { %2367 = vmatprep.subr.msk.bf16.mxu0 %vm313_vm0, %v2366_v6  ;;  %2371 = vmatprep.subr.msk.bf16.mxu1 %vm313_vm0, %v2370_v8  ;;  %v2390_v6 = vcombine.high %v1104_v58, %v1104_v58  ;;  %v2394_v8 = vcombine.high %v1161_v59, %v1161_v59  ;;  %v2414_v58 = vcombine.high %v1446_v52, %v1446_v52 }
  0x44   : > { %v2418_v59 = vcombine.high %v1503_v53, %v1503_v53  ;;  %v1731_v12 = vmax.bf16 %v2641_v0, %v1730_v23  ;;  %v2430_v9 = vcombine.high %v1674_v11, %v1674_v11  ;;  %v2429_v3 = vcombine.low %v1674_v11, %v1674_v11 }
  0x45   : > { %v1788_v14 = vmax.bf16 %v2641_v0, %v1787_v24  ;;  %v1845_v23 = vmax.bf16 %v2641_v0, %v1844_v33  ;;  %v1902_v25 = vmax.bf16 %v2641_v0, %v1901_v34  ;;  %v1959_v33 = vmax.bf16 %v2641_v0, %v1958_v41 }
  0x46   : > { %v2434_v10 = vcombine.high %v1731_v12, %v1731_v12  ;;  %v2433_v13 = vcombine.low %v1731_v12, %v1731_v12  ;;  %v2016_v36 = vmax.bf16 %v2641_v0, %v2015_v42  ;;  %v2073_v41 = vmax.bf16 %v2641_v0, %v2072_v43 }
  0x47   : > { %v2438_v18 = vcombine.high %v1788_v14, %v1788_v14  ;;  %v2442_v19 = vcombine.high %v1845_v23, %v1845_v23  ;;  %v2437_v15 = vcombine.low %v1788_v14, %v1788_v14  ;;  %v2441_v24 = vcombine.low %v1845_v23, %v1845_v23 }
  0x48   : > { %2360 = vmatmul.mubr.msk.bf16.vlgmr.msra.gmra.mrb[12].mxu0 %vm309_vm1, %v2800_v35  ;;  %2364 = vmatmul.mubr.msk.bf16.vlgmr.msra.gmra.mrb[12].mxu1 %vm309_vm1, %v2800_v35  ;;  %v2445_v26 = vcombine.low %v1902_v25, %v1902_v25  ;;  %v2449_v34 = vcombine.low %v1959_v33, %v1959_v33  ;;  %v2457_v37 = vcombine.low %v2073_v41, %v2073_v41 }
  0x49   : > { %775 = vmatpush1.bf16.msra.mxu0 %v769_v27  ;;  %832 = vmatpush1.bf16.msra.mxu1 %v826_v28  ;;  %v1111_v27 = vsel %vm313_vm0, %v2389_v16, 0  ;;  %v1168_v28 = vsel %vm313_vm0, %v2393_v17, 0  ;;  %v1681_v16 = vsel %vm313_vm0, %v2429_v3, 0  ;;  %v1738_v17 = vsel %vm313_vm0, %v2433_v13, 0 }
  0x4a   : > { %806 = vmatprep.mubr.bf16.mxu0 %v2641_v0  ;;  %863 = vmatprep.mubr.bf16.mxu1 %v2641_v0  ;;  %v2080_v42 = vsel %vm313_vm0, %v2457_v37, 0 }
  0x4b   : > { %2375 = vmatprep.subr.msk.bf16.mxu0 %vm313_vm0, %v2374_v31  ;;  %2379 = vmatprep.subr.msk.bf16.mxu1 %vm313_vm0, %v2378_v32  ;;  %v1331_v31 = vsub.bf16 %v1330_v20, %v2769_v7  ;;  %v1388_v32 = vsub.bf16 %v1387_v21, %v2769_v7  ;;  %v1795_v20 = vsel %vm313_vm0, %v2437_v15, 0  ;;  %v1852_v21 = vsel %vm313_vm0, %v2441_v24, 0 }
  0x4c   : > { %v2453_v7 = vcombine.low %v2016_v36, %v2016_v36 }
  0x4d   : > { %v1332_v44 = vmax.bf16 %v2641_v0, %v1331_v31  ;;  %v1389_v45 = vmax.bf16 %v2641_v0, %v1388_v32  ;;  %v2454_v31 = vcombine.high %v2016_v36, %v2016_v36  ;;  %v2458_v32 = vcombine.high %v2073_v41, %v2073_v41 }
  0x4e   : > { %v2023_v38 = vsel %vm313_vm0, %v2453_v7, 0 }
  0x50   : > { %2368 = vmatmul.mubr.msk.bf16.vlgmr.msra.gmra.mrb[16].mxu0 %vm309_vm1, %v2800_v35  ;;  %2372 = vmatmul.mubr.msk.bf16.vlgmr.msra.gmra.mrb[16].mxu1 %vm309_vm1, %v2800_v35 }
  0x51   : > { %889 = vmatpush1.bf16.msra.mxu0 %v883_v48  ;;  %946 = vmatpush1.bf16.msra.mxu1 %v940_v49  ;;  %v2406_v48 = vcombine.high %v1332_v44, %v1332_v44  ;;  %v2410_v49 = vcombine.high %v1389_v45, %v1389_v45 }
  0x52   : > { %920 = vmatprep.mubr.bf16.mxu0 %v2641_v0  ;;  %977 = vmatprep.mubr.bf16.mxu1 %v2641_v0 }
  0x53   : > { %2383 = vmatprep.subr.msk.bf16.mxu0 %vm313_vm0, %v2382_v50  ;;  %2387 = vmatprep.subr.msk.bf16.mxu1 %vm313_vm0, %v2386_v51  ;;  %v2405_v50 = vcombine.low %v1332_v44, %v1332_v44  ;;  %v2409_v51 = vcombine.low %v1389_v45, %v1389_v45 }
  0x55   : > { %v1339_v54 = vsel %vm313_vm0, %v2405_v50, 0  ;;  %v1396_v55 = vsel %vm313_vm0, %v2409_v51, 0 }
  0x58   : > { %2376 = vmatmul.mubr.msk.bf16.vlgmr.msra.gmra.mrb[20].mxu0 %vm309_vm1, %v2800_v35  ;;  %2380 = vmatmul.mubr.msk.bf16.vlgmr.msra.gmra.mrb[20].mxu1 %vm309_vm1, %v2800_v35 }
  0x59   : > { %1003 = vmatpush1.bf16.msra.mxu0 %v997_v4  ;;  %1060 = vmatpush1.bf16.msra.mxu1 %v1054_v5  ;;  %v2422_v4 = vcombine.high %v1560_v62, %v1560_v62  ;;  %v2426_v5 = vcombine.high %v1617_v63, %v1617_v63 }
  0x5a   : > { %1034 = vmatprep.mubr.bf16.mxu0 %v2641_v0  ;;  %1091 = vmatprep.mubr.bf16.mxu1 %v2641_v0 }
  0x5b   : > { %2391 = vmatprep.subr.msk.bf16.mxu0 %vm313_vm0, %v2390_v6  ;;  %2395 = vmatprep.subr.msk.bf16.mxu1 %vm313_vm0, %v2394_v8  ;;  %v1567_v6 = vsel %vm313_vm0, %v2421_v1, 0  ;;  %v1624_v8 = vsel %vm313_vm0, %v2425_v2, 0 }
  0x60   : > { %2384 = vmatmul.mubr.msk.bf16.vlgmr.msra.gmra.mrb[24].mxu0 %vm309_vm1, %v2800_v35  ;;  %2388 = vmatmul.mubr.msk.bf16.vlgmr.msra.gmra.mrb[24].mxu1 %vm309_vm1, %v2800_v35 }
  0x61   : > { %1117 = vmatpush1.bf16.msra.mxu0 %v1111_v27  ;;  %1174 = vmatpush1.bf16.msra.mxu1 %v1168_v28  ;;  %v2446_v27 = vcombine.high %v1902_v25, %v1902_v25  ;;  %v2450_v28 = vcombine.high %v1959_v33, %v1959_v33 }
  0x62   : > { %1148 = vmatprep.mubr.bf16.mxu0 %v2641_v0  ;;  %1205 = vmatprep.mubr.bf16.mxu1 %v2641_v0 }
  0x63   : > { %2399 = vmatprep.subr.msk.bf16.mxu0 %vm313_vm0, %v2398_v29  ;;  %2403 = vmatprep.subr.msk.bf16.mxu1 %vm313_vm0, %v2402_v30  ;;  %v1909_v29 = vsel %vm313_vm0, %v2445_v26, 0  ;;  %v1966_v30 = vsel %vm313_vm0, %v2449_v34, 0 }
  0x68   : > { %2392 = vmatmul.mubr.msk.bf16.vlgmr.msra.gmra.mrb[28].mxu0 %vm309_vm1, %v2800_v35  ;;  %2396 = vmatmul.mubr.msk.bf16.vlgmr.msra.gmra.mrb[28].mxu1 %vm309_vm1, %v2800_v35 }
  0x69   : > { %1231 = vmatpush1.bf16.msra.mxu0 %v1225_v46  ;;  %1288 = vmatpush1.bf16.msra.mxu1 %v1282_v47 }
  0x6a   : > { %1262 = vmatprep.mubr.bf16.mxu0 %v2641_v0  ;;  %1319 = vmatprep.mubr.bf16.mxu1 %v2641_v0 }
  0x6b   : > { %2407 = vmatprep.subr.msk.bf16.mxu0 %vm313_vm0, %v2406_v48  ;;  %2411 = vmatprep.subr.msk.bf16.mxu1 %vm313_vm0, %v2410_v49 }
  0x70   : > { %2400 = vmatmul.mubr.msk.bf16.vlgmr.msra.gmra.mrb[32].mxu0 %vm309_vm1, %v2800_v35  ;;  %2404 = vmatmul.mubr.msk.bf16.vlgmr.msra.gmra.mrb[32].mxu1 %vm309_vm1, %v2800_v35 }
  0x71   : > { %1345 = vmatpush1.bf16.msra.mxu0 %v1339_v54  ;;  %1402 = vmatpush1.bf16.msra.mxu1 %v1396_v55 }
  0x72   : > { %1376 = vmatprep.mubr.bf16.mxu0 %v2641_v0  ;;  %1433 = vmatprep.mubr.bf16.mxu1 %v2641_v0 }
  0x73   : > { %2415 = vmatprep.subr.msk.bf16.mxu0 %vm313_vm0, %v2414_v58  ;;  %2419 = vmatprep.subr.msk.bf16.mxu1 %vm313_vm0, %v2418_v59  ;;  %v2642_v58 = vmov 1  }
  0x74   : > { %2544 = vset.pattern.permute.xlu0 %v2642_v58 }
  0x75   : > { %2141 = vperm.xlu0 %2544, %v2788_v22  }
  0x78   : > { %2408 = vmatmul.mubr.msk.bf16.vlgmr.msra.gmra.mrb[36].mxu0 %vm309_vm1, %v2800_v35  ;;  %2412 = vmatmul.mubr.msk.bf16.vlgmr.msra.gmra.mrb[36].mxu1 %vm309_vm1, %v2800_v35 }
  0x79   : > { %1459 = vmatpush1.bf16.msra.mxu0 %v1453_v60  ;;  %1516 = vmatpush1.bf16.msra.mxu1 %v1510_v61 }
  0x7a   : > { %1490 = vmatprep.mubr.bf16.mxu0 %v2641_v0  ;;  %1547 = vmatprep.mubr.bf16.mxu1 %v2641_v0 }
  0x7b   : > { %2423 = vmatprep.subr.msk.bf16.mxu0 %vm313_vm0, %v2422_v4  ;;  %2427 = vmatprep.subr.msk.bf16.mxu1 %vm313_vm0, %v2426_v5 }
  0x80   : > { %2416 = vmatmul.mubr.msk.bf16.vlgmr.msra.gmra.mrb[40].mxu0 %vm309_vm1, %v2800_v35  ;;  %2420 = vmatmul.mubr.msk.bf16.vlgmr.msra.gmra.mrb[40].mxu1 %vm309_vm1, %v2800_v35 }
  0x81   : > { %1573 = vmatpush1.bf16.msra.mxu0 %v1567_v6  ;;  %1630 = vmatpush1.bf16.msra.mxu1 %v1624_v8 }
  0x82   : > { %1604 = vmatprep.mubr.bf16.mxu0 %v2641_v0  ;;  %1661 = vmatprep.mubr.bf16.mxu1 %v2641_v0 }
  0x83   : > { %2431 = vmatprep.subr.msk.bf16.mxu0 %vm313_vm0, %v2430_v9  ;;  %2435 = vmatprep.subr.msk.bf16.mxu1 %vm313_vm0, %v2434_v10 }
  0x88   : > { %2424 = vmatmul.mubr.msk.bf16.vlgmr.msra.gmra.mrb[44].mxu0 %vm309_vm1, %v2800_v35  ;;  %2428 = vmatmul.mubr.msk.bf16.vlgmr.msra.gmra.mrb[44].mxu1 %vm309_vm1, %v2800_v35 }
  0x89   : > { %1687 = vmatpush1.bf16.msra.mxu0 %v1681_v16  ;;  %1744 = vmatpush1.bf16.msra.mxu1 %v1738_v17 }
  0x8a   : > { %1718 = vmatprep.mubr.bf16.mxu0 %v2641_v0  ;;  %1775 = vmatprep.mubr.bf16.mxu1 %v2641_v0 }
  0x8b   : > { %2439 = vmatprep.subr.msk.bf16.mxu0 %vm313_vm0, %v2438_v18  ;;  %2443 = vmatprep.subr.msk.bf16.mxu1 %vm313_vm0, %v2442_v19 }
  0x90   : > { %2432 = vmatmul.mubr.msk.bf16.vlgmr.msra.gmra.mrb[48].mxu0 %vm309_vm1, %v2800_v35  ;;  %2436 = vmatmul.mubr.msk.bf16.vlgmr.msra.gmra.mrb[48].mxu1 %vm309_vm1, %v2800_v35 }
  0x91   : > { %1801 = vmatpush1.bf16.msra.mxu0 %v1795_v20  ;;  %1858 = vmatpush1.bf16.msra.mxu1 %v1852_v21 }
  0x92   : > { %1832 = vmatprep.mubr.bf16.mxu0 %v2641_v0  ;;  %1889 = vmatprep.mubr.bf16.mxu1 %v2641_v0 }
  0x93   : > { %2447 = vmatprep.subr.msk.bf16.mxu0 %vm313_vm0, %v2446_v27  ;;  %2451 = vmatprep.subr.msk.bf16.mxu1 %vm313_vm0, %v2450_v28 }
  0x98   : > { %2440 = vmatmul.mubr.msk.bf16.vlgmr.msra.gmra.mrb[52].mxu0 %vm309_vm1, %v2800_v35  ;;  %2444 = vmatmul.mubr.msk.bf16.vlgmr.msra.gmra.mrb[52].mxu1 %vm309_vm1, %v2800_v35 }
  0x99   : > { %1915 = vmatpush1.bf16.msra.mxu0 %v1909_v29  ;;  %1972 = vmatpush1.bf16.msra.mxu1 %v1966_v30 }
  0x9a   : > { %1946 = vmatprep.mubr.bf16.mxu0 %v2641_v0  ;;  %2003 = vmatprep.mubr.bf16.mxu1 %v2641_v0 }
  0x9b   : > { %2455 = vmatprep.subr.msk.bf16.mxu0 %vm313_vm0, %v2454_v31  ;;  %2459 = vmatprep.subr.msk.bf16.mxu1 %vm313_vm0, %v2458_v32 }
  0xa0   : > { %2448 = vmatmul.mubr.msk.bf16.vlgmr.msra.gmra.mrb[56].mxu0 %vm309_vm1, %v2800_v35  ;;  %2452 = vmatmul.mubr.msk.bf16.vlgmr.msra.gmra.mrb[56].mxu1 %vm309_vm1, %v2800_v35 }
  0xa1   : > { %2029 = vmatpush1.bf16.msra.mxu0 %v2023_v38  ;;  %2086 = vmatpush1.bf16.msra.mxu1 %v2080_v42 }
  0xa2   : > { %2060 = vmatprep.mubr.bf16.mxu0 %v2641_v0  ;;  %2117 = vmatprep.mubr.bf16.mxu1 %v2641_v0 }
  0xa8   : > { %2456 = vmatmul.mubr.msk.bf16.vlgmr.msra.gmra.mrb[60].mxu0 %vm309_vm1, %v2800_v35  ;;  %2460 = vmatmul.mubr.msk.bf16.vlgmr.msra.gmra.mrb[60].mxu1 %vm309_vm1, %v2800_v35 }
  0xa9   : > { %2187 = vmatprep.mubr.bf16.mxu0 %v2641_v0 }
 0x103   : > { %v354_v43 = vpop.f32.mrb[0].mxu0  ;;  %v409_v39 = vpop.f32.mrb[0].mxu1 }
 0x104   : > { %v416_v40 = vmax.f32 %v354_v43, %v409_v39  ;;  %v356_v44 = vpop.f32.mrb[1].mxu0  ;;  %v411_v45 = vpop.f32.mrb[1].mxu1 }
 0x105   : > { %v417_v46 = vmax.f32 %v356_v44, %v411_v45  ;;  %v358_v47 = vpop.f32.mrb[2].mxu0  ;;  %v413_v48 = vpop.f32.mrb[2].mxu1 }
 0x106   : > { %v359_v49 = vpop.f32.mrb[3].mxu0  ;;  %v414_v50 = vpop.f32.mrb[3].mxu1 }
 0x10b   : > { %v466_v51 = vpop.f32.mrb[4].mxu0  ;;  %v523_v52 = vpop.f32.mrb[4].mxu1 }
 0x10c   : > { %v473_v53 = vmax.f32 %v416_v40, %v466_v51  ;;  %v468_v54 = vpop.f32.mrb[5].mxu0  ;;  %v525_v55 = vpop.f32.mrb[5].mxu1 }
 0x10d   : > { %v474_v35 = vmax.f32 %v417_v46, %v468_v54  ;;  %v470_v59 = vpop.f32.mrb[6].mxu0  ;;  %v527_v0 = vpop.f32.mrb[6].mxu1 }
 0x10e   : > { %v530_v56 = vmax.f32 %v473_v53, %v523_v52  ;;  %v471_v57 = vpop.f32.mrb[7].mxu0  ;;  %v528_v62 = vpop.f32.mrb[7].mxu1 }
 0x10f   : > { %v531_v63 = vmax.f32 %v474_v35, %v525_v55 }
 0x113   : > { %v580_v60 = vpop.f32.mrb[8].mxu0  ;;  %v637_v61 = vpop.f32.mrb[8].mxu1 }
 0x114   : > { %v587_v4 = vmax.f32 %v530_v56, %v580_v60  ;;  %v582_v5 = vpop.f32.mrb[9].mxu0  ;;  %v639_v1 = vpop.f32.mrb[9].mxu1 }
 0x115   : > { %v588_v2 = vmax.f32 %v531_v63, %v582_v5  ;;  %v584_v11 = vpop.f32.mrb[10].mxu0  ;;  %v641_v12 = vpop.f32.mrb[10].mxu1 }
 0x116   : > { %v644_v6 = vmax.f32 %v587_v4, %v637_v61  ;;  %v585_v8 = vpop.f32.mrb[11].mxu0  ;;  %v642_v9 = vpop.f32.mrb[11].mxu1 }
 0x117   : > { %v645_v10 = vmax.f32 %v588_v2, %v639_v1 }
 0x11b   : > { %v694_v3 = vpop.f32.mrb[12].mxu0  ;;  %v751_v13 = vpop.f32.mrb[12].mxu1 }
 0x11c   : > { %v701_v14 = vmax.f32 %v644_v6, %v694_v3  ;;  %v696_v22 = vpop.f32.mrb[13].mxu0  ;;  %v753_v23 = vpop.f32.mrb[13].mxu1 }
 0x11d   : > { %v702_v16 = vmax.f32 %v645_v10, %v696_v22  ;;  %v698_v17 = vpop.f32.mrb[14].mxu0  ;;  %v755_v18 = vpop.f32.mrb[14].mxu1 }
 0x11e   : > { %v758_v19 = vmax.f32 %v701_v14, %v751_v13  ;;  %v699_v15 = vpop.f32.mrb[15].mxu0  ;;  %v756_v24 = vpop.f32.mrb[15].mxu1 }
 0x11f   : > { %v759_v25 = vmax.f32 %v702_v16, %v753_v23 }
 0x123   : > { %v808_v33 = vpop.f32.mrb[16].mxu0  ;;  %v865_v20 = vpop.f32.mrb[16].mxu1 }
 0x124   : > { %v815_v21 = vmax.f32 %v758_v19, %v808_v33  ;;  %v810_v27 = vpop.f32.mrb[17].mxu0  ;;  %v867_v28 = vpop.f32.mrb[17].mxu1 }
 0x125   : > { %v816_v26 = vmax.f32 %v759_v25, %v810_v27  ;;  %v812_v34 = vpop.f32.mrb[18].mxu0  ;;  %v869_v36 = vpop.f32.mrb[18].mxu1 }
 0x126   : > { %v872_v41 = vmax.f32 %v815_v21, %v865_v20  ;;  %v813_v29 = vpop.f32.mrb[19].mxu0  ;;  %v870_v30 = vpop.f32.mrb[19].mxu1 }
 0x127   : > { %v873_v31 = vmax.f32 %v816_v26, %v867_v28 }
 0x12b   : > { %v922_v32 = vpop.f32.mrb[20].mxu0  ;;  %v979_v7 = vpop.f32.mrb[20].mxu1 }
 0x12c   : > { %v929_v37 = vmax.f32 %v872_v41, %v922_v32  ;;  %v924_v38 = vpop.f32.mrb[21].mxu0  ;;  %v981_v42 = vpop.f32.mrb[21].mxu1 }
 0x12d   : > { %v930_v43 = vmax.f32 %v873_v31, %v924_v38  ;;  %v926_v39 = vpop.f32.mrb[22].mxu0  ;;  %v983_v40 = vpop.f32.mrb[22].mxu1 }
 0x12e   : > { %v986_v44 = vmax.f32 %v929_v37, %v979_v7  ;;  %v927_v45 = vpop.f32.mrb[23].mxu0  ;;  %v984_v46 = vpop.f32.mrb[23].mxu1 }
 0x12f   : > { %v987_v47 = vmax.f32 %v930_v43, %v981_v42 }
 0x133   : > { %v1036_v48 = vpop.f32.mrb[24].mxu0  ;;  %v1093_v49 = vpop.f32.mrb[24].mxu1 }
 0x134   : > { %v1043_v50 = vmax.f32 %v986_v44, %v1036_v48  ;;  %v1038_v51 = vpop.f32.mrb[25].mxu0  ;;  %v1095_v52 = vpop.f32.mrb[25].mxu1 }
 0x135   : > { %v1044_v53 = vmax.f32 %v987_v47, %v1038_v51  ;;  %v1040_v54 = vpop.f32.mrb[26].mxu0  ;;  %v1097_v55 = vpop.f32.mrb[26].mxu1 }
 0x136   : > { %v1100_v58 = vmax.f32 %v1043_v50, %v1093_v49  ;;  %v1041_v35 = vpop.f32.mrb[27].mxu0  ;;  %v1098_v59 = vpop.f32.mrb[27].mxu1 }
 0x137   : > { %v1101_v0 = vmax.f32 %v1044_v53, %v1095_v52 }
 0x13b   : > { %v1150_v56 = vpop.f32.mrb[28].mxu0  ;;  %v1207_v57 = vpop.f32.mrb[28].mxu1 }
 0x13c   : > { %v1157_v62 = vmax.f32 %v1100_v58, %v1150_v56  ;;  %v1152_v63 = vpop.f32.mrb[29].mxu0  ;;  %v1209_v60 = vpop.f32.mrb[29].mxu1 }
 0x13d   : > { %v1158_v61 = vmax.f32 %v1101_v0, %v1152_v63  ;;  %v1154_v4 = vpop.f32.mrb[30].mxu0  ;;  %v1211_v5 = vpop.f32.mrb[30].mxu1 }
 0x13e   : > { %v1214_v1 = vmax.f32 %v1157_v62, %v1207_v57  ;;  %v1155_v2 = vpop.f32.mrb[31].mxu0  ;;  %v1212_v11 = vpop.f32.mrb[31].mxu1 }
 0x13f   : > { %v1215_v12 = vmax.f32 %v1158_v61, %v1209_v60 }
 0x143   : > { %v1264_v6 = vpop.f32.mrb[32].mxu0  ;;  %v1321_v8 = vpop.f32.mrb[32].mxu1 }
 0x144   : > { %v1271_v9 = vmax.f32 %v1214_v1, %v1264_v6  ;;  %v1266_v10 = vpop.f32.mrb[33].mxu0  ;;  %v1323_v3 = vpop.f32.mrb[33].mxu1 }
 0x145   : > { %v1272_v13 = vmax.f32 %v1215_v12, %v1266_v10  ;;  %v1268_v14 = vpop.f32.mrb[34].mxu0  ;;  %v1325_v22 = vpop.f32.mrb[34].mxu1 }
 0x146   : > { %v1328_v23 = vmax.f32 %v1271_v9, %v1321_v8  ;;  %v1269_v16 = vpop.f32.mrb[35].mxu0  ;;  %v1326_v17 = vpop.f32.mrb[35].mxu1 }
 0x147   : > { %v1329_v18 = vmax.f32 %v1272_v13, %v1323_v3 }
 0x14b   : > { %v1378_v19 = vpop.f32.mrb[36].mxu0  ;;  %v1435_v15 = vpop.f32.mrb[36].mxu1 }
 0x14c   : > { %v1385_v24 = vmax.f32 %v1328_v23, %v1378_v19  ;;  %v1380_v25 = vpop.f32.mrb[37].mxu0  ;;  %v1437_v33 = vpop.f32.mrb[37].mxu1 }
 0x14d   : > { %v1386_v20 = vmax.f32 %v1329_v18, %v1380_v25  ;;  %v1382_v21 = vpop.f32.mrb[38].mxu0  ;;  %v1439_v27 = vpop.f32.mrb[38].mxu1 }
 0x14e   : > { %v1442_v28 = vmax.f32 %v1385_v24, %v1435_v15  ;;  %v1383_v26 = vpop.f32.mrb[39].mxu0  ;;  %v1440_v34 = vpop.f32.mrb[39].mxu1 }
 0x14f   : > { %v1443_v36 = vmax.f32 %v1386_v20, %v1437_v33 }
 0x153   : > { %v1492_v41 = vpop.f32.mrb[40].mxu0  ;;  %v1549_v29 = vpop.f32.mrb[40].mxu1 }
 0x154   : > { %v1499_v30 = vmax.f32 %v1442_v28, %v1492_v41  ;;  %v1494_v31 = vpop.f32.mrb[41].mxu0  ;;  %v1551_v32 = vpop.f32.mrb[41].mxu1 }
 0x155   : > { %v1500_v7 = vmax.f32 %v1443_v36, %v1494_v31  ;;  %v1496_v37 = vpop.f32.mrb[42].mxu0  ;;  %v1553_v38 = vpop.f32.mrb[42].mxu1 }
 0x156   : > { %v1556_v42 = vmax.f32 %v1499_v30, %v1549_v29  ;;  %v1497_v43 = vpop.f32.mrb[43].mxu0  ;;  %v1554_v39 = vpop.f32.mrb[43].mxu1 }
 0x157   : > { %v1557_v40 = vmax.f32 %v1500_v7, %v1551_v32  ;;  %v2131_v28 = vpop.permute.xlu0 %2130 }
 0x15b   : > { %v1606_v44 = vpop.f32.mrb[44].mxu0  ;;  %v1663_v45 = vpop.f32.mrb[44].mxu1 }
 0x15c   : > { %v1613_v46 = vmax.f32 %v1556_v42, %v1606_v44  ;;  %v1608_v47 = vpop.f32.mrb[45].mxu0  ;;  %v1665_v48 = vpop.f32.mrb[45].mxu1 }
 0x15d   : > { %v1614_v49 = vmax.f32 %v1557_v40, %v1608_v47  ;;  %v1610_v50 = vpop.f32.mrb[46].mxu0  ;;  %v1667_v51 = vpop.f32.mrb[46].mxu1 }
 0x15e   : > { %v1670_v52 = vmax.f32 %v1613_v46, %v1663_v45  ;;  %v1611_v53 = vpop.f32.mrb[47].mxu0  ;;  %v1668_v54 = vpop.f32.mrb[47].mxu1 }
 0x15f   : > { %v1671_v55 = vmax.f32 %v1614_v49, %v1665_v48  ;;  %v2137_v48 = vld [vmem:[%s3172_s4] sm:$0x3]  ;;  %v2142_v49 = vpop.permute.xlu0 %2141 }
 0x163   : > { %v1720_v58 = vpop.f32.mrb[48].mxu0  ;;  %v1777_v35 = vpop.f32.mrb[48].mxu1 }
 0x164   : > { %v1727_v59 = vmax.f32 %v1670_v52, %v1720_v58  ;;  %v1722_v0 = vpop.f32.mrb[49].mxu0  ;;  %v1779_v56 = vpop.f32.mrb[49].mxu1 }
 0x165   : > { %v1728_v57 = vmax.f32 %v1671_v55, %v1722_v0  ;;  %v1724_v62 = vpop.f32.mrb[50].mxu0  ;;  %v1781_v63 = vpop.f32.mrb[50].mxu1 }
 0x166   : > { %v1784_v60 = vmax.f32 %v1727_v59, %v1777_v35  ;;  %v1725_v61 = vpop.f32.mrb[51].mxu0  ;;  %v1782_v4 = vpop.f32.mrb[51].mxu1 }
 0x167   : > { %v1785_v5 = vmax.f32 %v1728_v57, %v1779_v56 }
 0x16b   : > { %v1834_v1 = vpop.f32.mrb[52].mxu0  ;;  %v1891_v2 = vpop.f32.mrb[52].mxu1 }
 0x16c   : > { %v1841_v11 = vmax.f32 %v1784_v60, %v1834_v1  ;;  %v1836_v12 = vpop.f32.mrb[53].mxu0  ;;  %v1893_v6 = vpop.f32.mrb[53].mxu1 }
 0x16d   : > { %v1842_v8 = vmax.f32 %v1785_v5, %v1836_v12  ;;  %v1838_v9 = vpop.f32.mrb[54].mxu0  ;;  %v1895_v10 = vpop.f32.mrb[54].mxu1 }
 0x16e   : > { %v1898_v3 = vmax.f32 %v1841_v11, %v1891_v2  ;;  %v1839_v13 = vpop.f32.mrb[55].mxu0  ;;  %v1896_v14 = vpop.f32.mrb[55].mxu1 }
 0x16f   : > { %v1899_v22 = vmax.f32 %v1842_v8, %v1893_v6 }
 0x173   : > { %v1948_v23 = vpop.f32.mrb[56].mxu0  ;;  %v2005_v16 = vpop.f32.mrb[56].mxu1 }
 0x174   : > { %v1955_v17 = vmax.f32 %v1898_v3, %v1948_v23  ;;  %v1950_v18 = vpop.f32.mrb[57].mxu0  ;;  %v2007_v19 = vpop.f32.mrb[57].mxu1 }
 0x175   : > { %v1956_v15 = vmax.f32 %v1899_v22, %v1950_v18  ;;  %v1952_v24 = vpop.f32.mrb[58].mxu0  ;;  %v2009_v25 = vpop.f32.mrb[58].mxu1 }
 0x176   : > { %v2012_v33 = vmax.f32 %v1955_v17, %v2005_v16  ;;  %v1953_v20 = vpop.f32.mrb[59].mxu0  ;;  %v2010_v21 = vpop.f32.mrb[59].mxu1 }
 0x177   : > { %v2013_v27 = vmax.f32 %v1956_v15, %v2007_v19 }
 0x17b   : > { %v2062_v26 = vpop.f32.mrb[60].mxu0  ;;  %v2119_v34 = vpop.f32.mrb[60].mxu1 }
 0x17c   : > { %v2069_v36 = vmax.f32 %v2012_v33, %v2062_v26  ;;  %v2064_v41 = vpop.f32.mrb[61].mxu0  ;;  %v2121_v29 = vpop.f32.mrb[61].mxu1 }
 0x17d   : > { %v2070_v30 = vmax.f32 %v2013_v27, %v2064_v41  ;;  %v2066_v31 = vpop.f32.mrb[62].mxu0  ;;  %v2123_v32 = vpop.f32.mrb[62].mxu1 }
 0x17e   : > { %v2126_v7 = vmax.f32 %v2069_v36, %v2119_v34  ;;  %v2067_v37 = vpop.f32.mrb[63].mxu0  ;;  %v2124_v38 = vpop.f32.mrb[63].mxu1 }
 0x17f   : > { %v2127_v42 = vmax.f32 %v2070_v30, %v2121_v29 }
 0x180   : > { %v2133_v43 = vadd.f32 %v2131_v28, %v2126_v7 }
 0x181   : > { %v2134_v39 = vadd.f32 %v2131_v28, %v2127_v42 }
 0x182   : > { %v2135_v40 = vmax.f32 %v2133_v43, 0.0 }
 0x183   : > { %v2136_v44 = vmax.f32 %v2134_v39, 0.0 }
 0x184   : > { %v2138_v45 = vpack.c.bf16 %v2135_v40, %v2135_v40 }
 0x185   : > { %v2139_v46 = vpack.c.bf16 %v2136_v44, %v2136_v44 }
 0x186   : > { %v2150_v47 = vsel %vm2148_vm2, %v2138_v45, 0 }
 0x187   : > { %2461 = vmatprep.subr.msk.bf16.mxu0 %vm2148_vm2, %v2139_v46 }
 0x188   : > { %2156 = vmatpush1.bf16.msra.mxu0 %v2150_v47 }
 0x18b   : > { %2462 = vmatmul.mubr.msk.bf16.vlgmr.msra.gmra.mrb[64].mxu0 %vm2144_vm3, %v2137_v48 }
 0x25e   : > { %v2189_v50 = vpop.f32.mrb[64].mxu0 }
 0x25f   : > { %v2191_v51 = vpop.f32.mrb[65].mxu0  ;;  %v2190_v52 = vadd.f32 %v2189_v50, %v2142_v49 }
 0x260   : > { %v2193_v53 = vpop.f32.mrb[66].mxu0  ;;  %v2192_v54 = vadd.f32 %v2191_v51, %v2142_v49 }
 0x261   : > { %v2196_v55 = vmax.f32 %v2190_v52, 0.0  ;;  %v2194_v58 = vpop.f32.mrb[67].mxu0 }
 0x262   : > { %v2197_v35 = vmax.f32 %v2192_v54, 0.0 }
 0x264   : > { %v2200_v59 = vcombine.low %v2196_v55, %v2197_v35 }
 0x266   : > { %2202 = vst [vmem:[%s267_s10] sm:$0xff] %v2200_v59 }
 0x267   : > { %2558 = shalt.err (!%p2555_p9)
}
 0x268   : > { %s2559_s17 = scalar_lea.hbm %s3115_s29, 128  ;;  %s2563_s30 = scalar_lea.hbm %s3173_s5, 512 }
 0x269   : > { %p2560_p10 = scmp.ne.s32.totalorder %s3115_s29, %s2559_s17  ;;  %p2564_p13 = scmp.lt.u32.totalorder %s3115_s29, %s3173_s5 }
 0x26a   : > { %p2565_p0 = scmp.lt.u32.totalorder %s2563_s30, %s2559_s17  ;;  %p2567_p2 = scmp.lt.u32.totalorder %s2559_s17, %s3115_s29 }
 0x26b   : > { %p2561_p11 = pnand %p2560_p10, %p2725_p3 }
 0x26c   : > { %p2566_p1 = por %p2565_p0, %p2564_p13 }
 0x26d   : > { %p2562_p12 = pneg %p2561_p11 }
 0x26e   : > { %p2568_p4 = por %p2567_p2, %p2566_p1 }
 0x270   : > { %p2569_p5 = pnand %p2568_p4, %p2562_p12 }
 0x272   : > { %2572 = shalt.err (!%p2569_p5)
}
 0x273   : > { %2470 = dma.vmem_to_hbm [thread:$0]  (%p2725_p3), %s3117_s21, 128, %s3115_s29, %s2204_s22  }
 0x274 PF: > { %p2476_p6 = scmp.ge.s32.totalorder %s2639_s25, 2  ;;  %s2232_s10 = sand.u32 1, %s2611_s18  }
 0x275   : > { %s2233_s14 = scalar_lea.sflag [#allocation3], %s2232_s10 }
 0x276   : > { %p2473_p7 = pnand %p2476_p6, %p2734_p8 }
 0x278   : > { %2606 = dma.done.wait (!%p2473_p7), %s2233_s14, 128  }
 0x279   : > { %2608 = vsyncadd (!%p2473_p7), %s2233_s14, 4294967168  ;;  %s18_s25 = sadd.s32 1, %s2639_s25   ;;  %s3180_s6 = sld [smem:[#allocation5_spill]] }
 0x27a   : > { %p15_p9 = scmp.ge.s32.totalorder %s18_s25, 6   ;;  %s3181_s28 = sld [smem:[#allocation6_spill]] }
 0x27b   : > { %s3182_s18 = smov %s2615_s19  ;;  %s3183_s19 = smov %s2619_s20 }
 0x27c   : > { %s3184_s20 = smov %s2743_s11  ;;  %s3185_s21 = smov %s2631_s23 }
 0x27d   : > { %s3186_s22 = smov %s2635_s24  ;;  %17 = sbr.rel (!%p15_p9) target bundleno = 5 (0x5), region = 78 }
 0x27f   : > { %s3187_s23 = smov %s3180_s6 }
 0x280   : > { %s3188_s24 = smov %s3181_s28 }
 0x284   :  { %2238 = vsyncpa [#allocation3], 1 }
 0x285   :  { %2240 = vsyncpa [#allocation3 + $0x1], 1 }

</bundles_post_ra>
